<compile_context>
chip_gen: v5e
topology: v5e:2x2
jax: 0.10.0
libtpu: 0.0.40
codegen_flags: <defaults>
</compile_context>

<pallas_src>
import functools

import jax
import jax.numpy as jnp
from jax import lax
from jax.experimental import pallas as pl
from jax.experimental.pallas import tpu as pltpu


def _round_up(x, m):
    return (x + m - 1) // m * m


# -----------------------------------------------------------------------------
# Pallas kernel: whole-sequence 2-layer LSTM + deferred FC in one invocation.
# -----------------------------------------------------------------------------
def _lstm_fc_kernel(x_ref,      # (T*B, E)    bf16 time-major flattened embeddings
                    wih0_ref,   # (E, 4H)     bf16 layer-0 input weight (transposed)
                    b0_ref,     # (1, 4H)     f32  layer-0 combined bias
                    wh0f_ref,   # (H, 8H)     bf16 fused [Whh0^T | Wih1^T]
                    whh1_ref,   # (H, 4H)     bf16 layer-1 recurrent weight (transposed)
                    b1_ref,     # (1, 4H)     f32  layer-1 combined bias
                    wfc_ref,    # (H, Opad)   bf16 FC weight (transposed, lane-padded)
                    bfc_ref,    # (1, Opad)   f32  FC bias (lane-padded)
                    out_ref,    # (T*B, Opad) f32  emissions slab
                    xw0_sc,     # VMEM (T*B, 4H) f32: precomputed layer-0 input proj
                    h1_sc,      # VMEM (T*B, H)  f32: layer-1 hidden history
                    *, T, B):
    H = h1_sc.shape[-1]
    H4 = 4 * H

    # ---- Hoisted non-recurrent work: one big lane-dense bf16 matmul, bias folded.
    xw0_sc[...] = (jnp.dot(x_ref[...], wih0_ref[...],
                           preferred_element_type=jnp.float32) + b0_ref[...])

    # Hoist weight loads / bias broadcast out of the time loop.
    wh0f = wh0f_ref[...]                               # (H, 8H) bf16
    whh1 = whh1_ref[...]                               # (H, 4H) bf16
    b1 = jnp.broadcast_to(b1_ref[...], (B, H4))        # hoisted broadcast_in_dim

    def gates_to_hc(gates, c_prev):
        # Full-vreg EUP passes over (B, 4H), then slice (PyTorch order i,f,g,o).
        sg = jax.nn.sigmoid(gates)
        tg = jnp.tanh(gates)
        i = sg[:, 0 * H:1 * H]
        f = sg[:, 1 * H:2 * H]
        g = tg[:, 2 * H:3 * H]
        o = sg[:, 3 * H:4 * H]
        c_new = f * c_prev + i * g
        h_new = o * jnp.tanh(c_new)
        return h_new, c_new

    def step(t, carry):
        # p0 = h0(t-1) @ Whh0^T,  p1 = h1(t-1) @ Whh1^T  (precomputed partials).
        p0, c0, p1, c1 = carry
        r = pl.multiple_of(t * B, B)

        # Layer 0: its recurrent matmul was already issued last step; only the
        # add + EUP chain remains on the critical path here.
        g0 = xw0_sc[pl.ds(r, B), :] + p0
        h0, c0 = gates_to_hc(g0, c0)
        h0b = h0.astype(jnp.bfloat16)

        # Single fused dot for both consumers of h0(t):
        #   [:, :4H] = h0 @ Whh0^T -> layer-0 recurrent partial for step t+1
        #   [:, 4H:] = h0 @ Wih1^T -> layer-1 input contribution for step t
        fused = jnp.dot(h0b, wh0f, preferred_element_type=jnp.float32)  # (B, 8H)
        p0_next = fused[:, :H4]

        g1 = fused[:, H4:] + p1 + b1
        h1, c1 = gates_to_hc(g1, c1)
        h1_sc[pl.ds(r, B), :] = h1

        # Next step's layer-1 recurrent partial: only needed AFTER step t+1's
        # layer-0, so the scheduler can overlap this dot off the critical path.
        p1_next = jnp.dot(h1.astype(jnp.bfloat16), whh1,
                          preferred_element_type=jnp.float32)
        return p0_next, c0, p1_next, c1

    z4 = jnp.zeros((B, H4), jnp.float32)
    zh = jnp.zeros((B, H), jnp.float32)
    # Capped unroll: keeps LLO scheduling visibility without instruction-memory
    # / vreg live-range blowup at long T.
    lax.fori_loop(0, T, step, (z4, zh, z4, zh), unroll=min(T, 8))

    # ---- Deferred FC: one (T*B, H)@(H, Opad) bf16 matmul, unmasked lane-dense store.
    out_ref[...] = (jnp.dot(h1_sc[...].astype(jnp.bfloat16), wfc_ref[...],
                            preferred_element_type=jnp.float32) + bfc_ref[...])


# -----------------------------------------------------------------------------
# One-time weight plumbing (hoisted out of the per-call hot path).
# -----------------------------------------------------------------------------
def prepare_kernel_params(params):
    H = params["whh0T"].shape[0]
    O = params["wfcT"].shape[1]
    O_pad = max(128, _round_up(O, 128))   # lane-dense output slab
    wfc = jnp.zeros((H, O_pad), jnp.float32).at[:, :O].set(params["wfcT"])
    bfc = jnp.zeros((1, O_pad), jnp.float32).at[:, :O].set(params["bfc"])
    return {
        "embedding": params["embedding"].astype(jnp.bfloat16),
        "wih0T": params["wih0T"].astype(jnp.bfloat16),
        "b0": params["b0"].astype(jnp.float32),
        # fused consumer of h0(t): [Whh0^T | Wih1^T] -> (H, 8H)
        "wh0_fused": jnp.concatenate(
            [params["whh0T"], params["wih1T"]], axis=1).astype(jnp.bfloat16),
        "whh1T": params["whh1T"].astype(jnp.bfloat16),
        "b1": params["b1"].astype(jnp.float32),
        "wfcT": wfc.astype(jnp.bfloat16),
        "bfc": bfc,
        "num_tags": O,
    }


def lstm_crf_emissions(x_ids, kparams):
    """x_ids: (T, B) int32 token ids; returns emissions (T, B, O) f32."""
    emb = kparams["embedding"]
    E = emb.shape[1]
    H = kparams["whh1T"].shape[0]
    O_pad = kparams["wfcT"].shape[1]
    O = kparams["num_tags"]
    T, B = x_ids.shape
    B_pad = max(8, _round_up(B, 8))       # pad batch to sublane count
    TB = T * B_pad

    # Embedding gather (bf16 table) + batch pad + time-major flatten: glue.
    embeds = emb[x_ids]                                          # (T, B, E) bf16
    x = jnp.zeros((T, B_pad, E), jnp.bfloat16).at[:, :B, :].set(embeds)
    x = x.reshape(TB, E)

    full2d = lambda shape: pl.BlockSpec(shape, lambda i: (0, 0))

    # Explicit VMEM budget (v5e default scoped limit is only 16 MiB).
    in_bytes = (TB * E * 2 + E * 4 * H * 2 + 4 * H * 4 + H * 8 * H * 2
                + H * 4 * H * 2 + 4 * H * 4 + H * O_pad * 2 + O_pad * 4)
    out_bytes = TB * O_pad * 4
    scratch_bytes = TB * 4 * H * 4 + TB * H * 4
    vmem_limit = int(min(100 << 20,
                         max(32 << 20,
                             2 * (in_bytes + out_bytes) + scratch_bytes + (2 << 20))))

    out = pl.pallas_call(
        functools.partial(_lstm_fc_kernel, T=T, B=B_pad),
        out_shape=jax.ShapeDtypeStruct((TB, O_pad), jnp.float32),
        grid_spec=pltpu.PrefetchScalarGridSpec(
            num_scalar_prefetch=0,
            grid=(1,),                               # whole sequence per call
            in_specs=[
                full2d((TB, E)),                     # embeddings
                full2d((E, 4 * H)), full2d((1, 4 * H)),
                full2d((H, 8 * H)), full2d((H, 4 * H)), full2d((1, 4 * H)),
                full2d((H, O_pad)), full2d((1, O_pad)),
            ],
            out_specs=full2d((TB, O_pad)),
            scratch_shapes=[
                pltpu.VMEM((TB, 4 * H), jnp.float32),  # xw0 (input projection)
                pltpu.VMEM((TB, H), jnp.float32),      # h1 history
            ],
        ),
        compiler_params=pltpu.CompilerParams(
            dimension_semantics=("arbitrary",),        # serial time recurrence
            vmem_limit_bytes=vmem_limit),
    )(x, kparams["wih0T"], kparams["b0"], kparams["wh0_fused"],
      kparams["whh1T"], kparams["b1"], kparams["wfcT"], kparams["bfc"])

    # Un-pad: (T*B_pad, O_pad) -> (T, B, O)
    return out.reshape(T, B_pad, O_pad)[:, :B, :O]


# -----------------------------------------------------------------------------
# Parameter construction (deterministic) and pure-JAX f32 reference.
# -----------------------------------------------------------------------------
def make_params(key, vocab_size, E, H, O):
    ks = jax.random.split(key, 12)
    s = 0.1
    emb = jax.random.normal(ks[0], (vocab_size, E), jnp.float32) * s
    emb = emb.at[0].set(0.0)  # padding_idx=0

    def mk(k, shape):
        return jax.random.normal(k, shape, jnp.float32) * s

    return {
        "embedding": emb,
        # layer 0: weights stored already transposed for x @ W^T
        "wih0T": mk(ks[1], (E, 4 * H)),
        "whh0T": mk(ks[2], (H, 4 * H)),
        "b0": (mk(ks[3], (1, 4 * H)) + mk(ks[4], (1, 4 * H))),  # b_ih + b_hh
        # layer 1
        "wih1T": mk(ks[5], (H, 4 * H)),
        "whh1T": mk(ks[6], (H, 4 * H)),
        "b1": (mk(ks[7], (1, 4 * H)) + mk(ks[8], (1, 4 * H))),
        # fc
        "wfcT": mk(ks[9], (H, O)),
        "bfc": mk(ks[10], (1, O)),
    }


def reference_forward(x_ids, params):
    """Pure-JAX f32 reference of the PyTorch forward (for verification)."""
    embeds = params["embedding"][x_ids]          # (T, B, E)
    T, B, E = embeds.shape
    H = params["whh0T"].shape[0]

    def cell(x_in, h, c, wihT, whhT, b):
        g = x_in @ wihT + h @ whhT + b
        i = jax.nn.sigmoid(g[:, 0 * H:1 * H])
        f = jax.nn.sigmoid(g[:, 1 * H:2 * H])
        gg = jnp.tanh(g[:, 2 * H:3 * H])
        o = jax.nn.sigmoid(g[:, 3 * H:4 * H])
        c_new = f * c + i * gg
        h_new = o * jnp.tanh(c_new)
        return h_new, c_new

    def step(carry, x_t):
        h0, c0, h1, c1 = carry
        h0, c0 = cell(x_t, h0, c0, params["wih0T"], params["whh0T"], params["b0"])
        h1, c1 = cell(h0, h1, c1, params["wih1T"], params["whh1T"], params["b1"])
        em = h1 @ params["wfcT"] + params["bfc"]
        return (h0, c0, h1, c1), em

    init = tuple(jnp.zeros((B, H), jnp.float32) for _ in range(4))
    _, emissions = jax.lax.scan(step, init, embeds)
    return emissions


if __name__ == "__main__":
    # Small deterministic config
    vocab_size = 50      # input_size
    E = 32               # embedding_dim
    H = 32               # lstm_units
    O = 5                # output_size (num tags)
    T = 8                # max_len / seq_len
    B = 2                # batch

    key = jax.random.PRNGKey(0)
    k_params, k_x = jax.random.split(key)
    params = make_params(k_params, vocab_size, E, H, O)
    kparams = prepare_kernel_params(params)      # one-time weight plumbing

    # x: (seq_len, batch) int token ids (nn.LSTM default batch_first=False)
    x_ids = jax.random.randint(k_x, (T, B), 0, vocab_size, dtype=jnp.int32)

    emissions_fn = jax.jit(functools.partial(lstm_crf_emissions, kparams=kparams))
    emissions = jax.block_until_ready(emissions_fn(x_ids))       # (T, B, O)

    # Verify against pure-JAX f32 reference (bf16 MXU operands -> loosened tol).
    ref = jax.block_until_ready(reference_forward(x_ids, params))
    assert emissions.shape == (T, B, O)
    assert jnp.allclose(emissions, ref, atol=3e-2, rtol=3e-2), "mismatch vs reference"

    # TODO(synk): CRF decode path (self.crf) is never defined in the module's
    # __init__, so only the emission forward pass is implemented.
    print("KERNEL_OK")
</pallas_src>

<mosaic_0001>
module attributes {stable_mosaic.version = 11 : i64} {
  func.func @_lstm_fc_kernel(%arg0: i32, %arg1: memref<64x32xbf16, #tpu.memory_space<vmem>>, %arg2: memref<32x128xbf16, #tpu.memory_space<vmem>>, %arg3: memref<1x128xf32, #tpu.memory_space<vmem>>, %arg4: memref<32x256xbf16, #tpu.memory_space<vmem>>, %arg5: memref<32x128xbf16, #tpu.memory_space<vmem>>, %arg6: memref<1x128xf32, #tpu.memory_space<vmem>>, %arg7: memref<32x128xbf16, #tpu.memory_space<vmem>>, %arg8: memref<1x128xf32, #tpu.memory_space<vmem>>, %arg9: memref<64x128xf32, #tpu.memory_space<vmem>>, %arg10: memref<64x128xf32, #tpu.memory_space<vmem>>, %arg11: memref<64x32xf32, #tpu.memory_space<vmem>>) attributes {dimension_semantics = [#tpu.dimension_semantics<arbitrary>], iteration_bounds = array<i64: 1>, scalar_prefetch = 0 : i64, scratch_operands = 2 : i64, tpu.core_type = #tpu.core_type<tc>, window_params = [{pipeline_mode = #tpu.pipeline_mode<synchronous>, transform_indices = @transform_0, window_bounds = array<i64: 64, 32>}, {pipeline_mode = #tpu.pipeline_mode<synchronous>, transform_indices = @transform_1, window_bounds = array<i64: 32, 128>}, {pipeline_mode = #tpu.pipeline_mode<synchronous>, transform_indices = @transform_2, window_bounds = array<i64: 1, 128>}, {pipeline_mode = #tpu.pipeline_mode<synchronous>, transform_indices = @transform_3, window_bounds = array<i64: 32, 256>}, {pipeline_mode = #tpu.pipeline_mode<synchronous>, transform_indices = @transform_4, window_bounds = array<i64: 32, 128>}, {pipeline_mode = #tpu.pipeline_mode<synchronous>, transform_indices = @transform_5, window_bounds = array<i64: 1, 128>}, {pipeline_mode = #tpu.pipeline_mode<synchronous>, transform_indices = @transform_6, window_bounds = array<i64: 32, 128>}, {pipeline_mode = #tpu.pipeline_mode<synchronous>, transform_indices = @transform_7, window_bounds = array<i64: 1, 128>}, {pipeline_mode = #tpu.pipeline_mode<synchronous>, transform_indices = @transform_8, window_bounds = array<i64: 64, 128>}]} {
    %c0 = arith.constant 0 : index
    %c0_0 = arith.constant 0 : index
    %0 = vector.load %arg1[%c0, %c0_0] : memref<64x32xbf16, #tpu.memory_space<vmem>>, vector<64x32xbf16>
    %c0_1 = arith.constant 0 : index
    %c0_2 = arith.constant 0 : index
    %1 = vector.load %arg2[%c0_1, %c0_2] : memref<32x128xbf16, #tpu.memory_space<vmem>>, vector<32x128xbf16>
    %cst = arith.constant dense<0.000000e+00> : vector<64x128xf32>
    %2 = tpu.matmul %0, %1, %cst {dimension_numbers = #tpu.dot_dimension_numbers<[1], [0], [0], [1], [0, 0, 1, 1], [], []>} : vector<64x32xbf16>, vector<32x128xbf16>, vector<64x128xf32> -> vector<64x128xf32>
    %c0_3 = arith.constant 0 : index
    %c0_4 = arith.constant 0 : index
    %3 = vector.load %arg3[%c0_3, %c0_4] : memref<1x128xf32, #tpu.memory_space<vmem>>, vector<1x128xf32>
    %4 = vector.broadcast %3 : vector<1x128xf32> to vector<64x128xf32>
    %5 = arith.addf %2, %4 : vector<64x128xf32>
    %c0_5 = arith.constant 0 : index
    %c0_6 = arith.constant 0 : index
    %6 = vector.load %arg10[%c0_5, %c0_6] : memref<64x128xf32, #tpu.memory_space<vmem>>, vector<64x128xf32>
    tpu.vector_store %arg10[%c0_5, %c0_6], %5 {strides = array<i32>} : memref<64x128xf32, #tpu.memory_space<vmem>>, vector<64x128xf32>,
    %c0_7 = arith.constant 0 : index
    %c0_8 = arith.constant 0 : index
    %7 = vector.load %arg4[%c0_7, %c0_8] : memref<32x256xbf16, #tpu.memory_space<vmem>>, vector<32x256xbf16>
    %c0_9 = arith.constant 0 : index
    %c0_10 = arith.constant 0 : index
    %8 = vector.load %arg5[%c0_9, %c0_10] : memref<32x128xbf16, #tpu.memory_space<vmem>>, vector<32x128xbf16>
    %c0_11 = arith.constant 0 : index
    %c0_12 = arith.constant 0 : index
    %9 = vector.load %arg6[%c0_11, %c0_12] : memref<1x128xf32, #tpu.memory_space<vmem>>, vector<1x128xf32>
    %10 = vector.shape_cast %9 : vector<1x128xf32> to vector<1x128xf32>
    %11 = vector.broadcast %10 : vector<1x128xf32> to vector<8x128xf32>
    %cst_13 = arith.constant 0.000000e+00 : f32
    %12 = vector.broadcast %cst_13 : f32 to vector<8x128xf32>
    %cst_14 = arith.constant 0.000000e+00 : f32
    %13 = vector.broadcast %cst_14 : f32 to vector<8x32xf32>
    %c0_i32 = arith.constant 0 : i32
    %c8_i32 = arith.constant 8 : i32
    %14 = arith.muli %c0_i32, %c8_i32 : i32
    %15 = tpu.assume_multiple %14, 8 : i32
    %16 = arith.index_cast %15 : i32 to index
    %c0_15 = arith.constant 0 : index
    %17 = vector.load %arg10[%16, %c0_15] : memref<64x128xf32, #tpu.memory_space<vmem>>, vector<8x128xf32>
    %18 = arith.addf %17, %12 : vector<8x128xf32>
    %19 = arith.negf %18 : vector<8x128xf32>
    %20 = math.exp %19 : vector<8x128xf32>
    %cst_16 = arith.constant 1.000000e+00 : f32
    %21 = vector.broadcast %cst_16 : f32 to vector<8x128xf32>
    %22 = arith.addf %21, %20 : vector<8x128xf32>
    %23 = arith.divf %21, %22 : vector<8x128xf32>
    %24 = math.tanh %18 : vector<8x128xf32>
    %25 = vector.extract_strided_slice %23 {offsets = [0, 0], sizes = [8, 32], strides = [1, 1]} : vector<8x128xf32> to vector<8x32xf32>
    %26 = vector.extract_strided_slice %23 {offsets = [0, 32], sizes = [8, 32], strides = [1, 1]} : vector<8x128xf32> to vector<8x32xf32>
    %27 = vector.extract_strided_slice %24 {offsets = [0, 64], sizes = [8, 32], strides = [1, 1]} : vector<8x128xf32> to vector<8x32xf32>
    %28 = vector.extract_strided_slice %23 {offsets = [0, 96], sizes = [8, 32], strides = [1, 1]} : vector<8x128xf32> to vector<8x32xf32>
    %29 = arith.mulf %26, %13 : vector<8x32xf32>
    %30 = arith.mulf %25, %27 : vector<8x32xf32>
    %31 = arith.addf %29, %30 : vector<8x32xf32>
    %32 = math.tanh %31 : vector<8x32xf32>
    %33 = arith.mulf %28, %32 : vector<8x32xf32>
    %34 = arith.truncf %33 : vector<8x32xf32> to vector<8x32xbf16>
    %cst_17 = arith.constant dense<0.000000e+00> : vector<8x256xf32>
    %35 = tpu.matmul %34, %7, %cst_17 {dimension_numbers = #tpu.dot_dimension_numbers<[1], [0], [0], [1], [0, 0, 1, 1], [], []>} : vector<8x32xbf16>, vector<32x256xbf16>, vector<8x256xf32> -> vector<8x256xf32>
    %36 = vector.extract_strided_slice %35 {offsets = [0, 0], sizes = [8, 128], strides = [1, 1]} : vector<8x256xf32> to vector<8x128xf32>
    %37 = vector.extract_strided_slice %35 {offsets = [0, 128], sizes = [8, 128], strides = [1, 1]} : vector<8x256xf32> to vector<8x128xf32>
    %38 = arith.addf %37, %12 : vector<8x128xf32>
    %39 = arith.addf %38, %11 : vector<8x128xf32>
    %40 = arith.negf %39 : vector<8x128xf32>
    %41 = math.exp %40 : vector<8x128xf32>
    %cst_18 = arith.constant 1.000000e+00 : f32
    %42 = vector.broadcast %cst_18 : f32 to vector<8x128xf32>
    %43 = arith.addf %42, %41 : vector<8x128xf32>
    %44 = arith.divf %42, %43 : vector<8x128xf32>
    %45 = math.tanh %39 : vector<8x128xf32>
    %46 = vector.extract_strided_slice %44 {offsets = [0, 0], sizes = [8, 32], strides = [1, 1]} : vector<8x128xf32> to vector<8x32xf32>
    %47 = vector.extract_strided_slice %44 {offsets = [0, 32], sizes = [8, 32], strides = [1, 1]} : vector<8x128xf32> to vector<8x32xf32>
    %48 = vector.extract_strided_slice %45 {offsets = [0, 64], sizes = [8, 32], strides = [1, 1]} : vector<8x128xf32> to vector<8x32xf32>
    %49 = vector.extract_strided_slice %44 {offsets = [0, 96], sizes = [8, 32], strides = [1, 1]} : vector<8x128xf32> to vector<8x32xf32>
    %50 = arith.mulf %47, %13 : vector<8x32xf32>
    %51 = arith.mulf %46, %48 : vector<8x32xf32>
    %52 = arith.addf %50, %51 : vector<8x32xf32>
    %53 = math.tanh %52 : vector<8x32xf32>
    %54 = arith.mulf %49, %53 : vector<8x32xf32>
    %55 = arith.index_cast %15 : i32 to index
    %c0_19 = arith.constant 0 : index
    %56 = vector.load %arg11[%55, %c0_19] : memref<64x32xf32, #tpu.memory_space<vmem>>, vector<8x32xf32>
    tpu.vector_store %arg11[%55, %c0_19], %54 {strides = array<i32>} : memref<64x32xf32, #tpu.memory_space<vmem>>, vector<8x32xf32>,
    %57 = arith.truncf %54 : vector<8x32xf32> to vector<8x32xbf16>
    %cst_20 = arith.constant dense<0.000000e+00> : vector<8x128xf32>
    %58 = tpu.matmul %57, %8, %cst_20 {dimension_numbers = #tpu.dot_dimension_numbers<[1], [0], [0], [1], [0, 0, 1, 1], [], []>} : vector<8x32xbf16>, vector<32x128xbf16>, vector<8x128xf32> -> vector<8x128xf32>
    %c1_i32 = arith.constant 1 : i32
    %c8_i32_21 = arith.constant 8 : i32
    %59 = arith.muli %c1_i32, %c8_i32_21 : i32
    %60 = tpu.assume_multiple %59, 8 : i32
    %61 = arith.index_cast %60 : i32 to index
    %c0_22 = arith.constant 0 : index
    %62 = vector.load %arg10[%61, %c0_22] : memref<64x128xf32, #tpu.memory_space<vmem>>, vector<8x128xf32>
    %63 = arith.addf %62, %36 : vector<8x128xf32>
    %64 = arith.negf %63 : vector<8x128xf32>
    %65 = math.exp %64 : vector<8x128xf32>
    %cst_23 = arith.constant 1.000000e+00 : f32
    %66 = vector.broadcast %cst_23 : f32 to vector<8x128xf32>
    %67 = arith.addf %66, %65 : vector<8x128xf32>
    %68 = arith.divf %66, %67 : vector<8x128xf32>
    %69 = math.tanh %63 : vector<8x128xf32>
    %70 = vector.extract_strided_slice %68 {offsets = [0, 0], sizes = [8, 32], strides = [1, 1]} : vector<8x128xf32> to vector<8x32xf32>
    %71 = vector.extract_strided_slice %68 {offsets = [0, 32], sizes = [8, 32], strides = [1, 1]} : vector<8x128xf32> to vector<8x32xf32>
    %72 = vector.extract_strided_slice %69 {offsets = [0, 64], sizes = [8, 32], strides = [1, 1]} : vector<8x128xf32> to vector<8x32xf32>
    %73 = vector.extract_strided_slice %68 {offsets = [0, 96], sizes = [8, 32], strides = [1, 1]} : vector<8x128xf32> to vector<8x32xf32>
    %74 = arith.mulf %71, %31 : vector<8x32xf32>
    %75 = arith.mulf %70, %72 : vector<8x32xf32>
    %76 = arith.addf %74, %75 : vector<8x32xf32>
    %77 = math.tanh %76 : vector<8x32xf32>
    %78 = arith.mulf %73, %77 : vector<8x32xf32>
    %79 = arith.truncf %78 : vector<8x32xf32> to vector<8x32xbf16>
    %cst_24 = arith.constant dense<0.000000e+00> : vector<8x256xf32>
    %80 = tpu.matmul %79, %7, %cst_24 {dimension_numbers = #tpu.dot_dimension_numbers<[1], [0], [0], [1], [0, 0, 1, 1], [], []>} : vector<8x32xbf16>, vector<32x256xbf16>, vector<8x256xf32> -> vector<8x256xf32>
    %81 = vector.extract_strided_slice %80 {offsets = [0, 0], sizes = [8, 128], strides = [1, 1]} : vector<8x256xf32> to vector<8x128xf32>
    %82 = vector.extract_strided_slice %80 {offsets = [0, 128], sizes = [8, 128], strides = [1, 1]} : vector<8x256xf32> to vector<8x128xf32>
    %83 = arith.addf %82, %58 : vector<8x128xf32>
    %84 = arith.addf %83, %11 : vector<8x128xf32>
    %85 = arith.negf %84 : vector<8x128xf32>
    %86 = math.exp %85 : vector<8x128xf32>
    %cst_25 = arith.constant 1.000000e+00 : f32
    %87 = vector.broadcast %cst_25 : f32 to vector<8x128xf32>
    %88 = arith.addf %87, %86 : vector<8x128xf32>
    %89 = arith.divf %87, %88 : vector<8x128xf32>
    %90 = math.tanh %84 : vector<8x128xf32>
    %91 = vector.extract_strided_slice %89 {offsets = [0, 0], sizes = [8, 32], strides = [1, 1]} : vector<8x128xf32> to vector<8x32xf32>
    %92 = vector.extract_strided_slice %89 {offsets = [0, 32], sizes = [8, 32], strides = [1, 1]} : vector<8x128xf32> to vector<8x32xf32>
    %93 = vector.extract_strided_slice %90 {offsets = [0, 64], sizes = [8, 32], strides = [1, 1]} : vector<8x128xf32> to vector<8x32xf32>
    %94 = vector.extract_strided_slice %89 {offsets = [0, 96], sizes = [8, 32], strides = [1, 1]} : vector<8x128xf32> to vector<8x32xf32>
    %95 = arith.mulf %92, %52 : vector<8x32xf32>
    %96 = arith.mulf %91, %93 : vector<8x32xf32>
    %97 = arith.addf %95, %96 : vector<8x32xf32>
    %98 = math.tanh %97 : vector<8x32xf32>
    %99 = arith.mulf %94, %98 : vector<8x32xf32>
    %100 = arith.index_cast %60 : i32 to index
    %c0_26 = arith.constant 0 : index
    %101 = vector.load %arg11[%100, %c0_26] : memref<64x32xf32, #tpu.memory_space<vmem>>, vector<8x32xf32>
    tpu.vector_store %arg11[%100, %c0_26], %99 {strides = array<i32>} : memref<64x32xf32, #tpu.memory_space<vmem>>, vector<8x32xf32>,
    %102 = arith.truncf %99 : vector<8x32xf32> to vector<8x32xbf16>
    %cst_27 = arith.constant dense<0.000000e+00> : vector<8x128xf32>
    %103 = tpu.matmul %102, %8, %cst_27 {dimension_numbers = #tpu.dot_dimension_numbers<[1], [0], [0], [1], [0, 0, 1, 1], [], []>} : vector<8x32xbf16>, vector<32x128xbf16>, vector<8x128xf32> -> vector<8x128xf32>
    %c2_i32 = arith.constant 2 : i32
    %c8_i32_28 = arith.constant 8 : i32
    %104 = arith.muli %c2_i32, %c8_i32_28 : i32
    %105 = tpu.assume_multiple %104, 8 : i32
    %106 = arith.index_cast %105 : i32 to index
    %c0_29 = arith.constant 0 : index
    %107 = vector.load %arg10[%106, %c0_29] : memref<64x128xf32, #tpu.memory_space<vmem>>, vector<8x128xf32>
    %108 = arith.addf %107, %81 : vector<8x128xf32>
    %109 = arith.negf %108 : vector<8x128xf32>
    %110 = math.exp %109 : vector<8x128xf32>
    %cst_30 = arith.constant 1.000000e+00 : f32
    %111 = vector.broadcast %cst_30 : f32 to vector<8x128xf32>
    %112 = arith.addf %111, %110 : vector<8x128xf32>
    %113 = arith.divf %111, %112 : vector<8x128xf32>
    %114 = math.tanh %108 : vector<8x128xf32>
    %115 = vector.extract_strided_slice %113 {offsets = [0, 0], sizes = [8, 32], strides = [1, 1]} : vector<8x128xf32> to vector<8x32xf32>
    %116 = vector.extract_strided_slice %113 {offsets = [0, 32], sizes = [8, 32], strides = [1, 1]} : vector<8x128xf32> to vector<8x32xf32>
    %117 = vector.extract_strided_slice %114 {offsets = [0, 64], sizes = [8, 32], strides = [1, 1]} : vector<8x128xf32> to vector<8x32xf32>
    %118 = vector.extract_strided_slice %113 {offsets = [0, 96], sizes = [8, 32], strides = [1, 1]} : vector<8x128xf32> to vector<8x32xf32>
    %119 = arith.mulf %116, %76 : vector<8x32xf32>
    %120 = arith.mulf %115, %117 : vector<8x32xf32>
    %121 = arith.addf %119, %120 : vector<8x32xf32>
    %122 = math.tanh %121 : vector<8x32xf32>
    %123 = arith.mulf %118, %122 : vector<8x32xf32>
    %124 = arith.truncf %123 : vector<8x32xf32> to vector<8x32xbf16>
    %cst_31 = arith.constant dense<0.000000e+00> : vector<8x256xf32>
    %125 = tpu.matmul %124, %7, %cst_31 {dimension_numbers = #tpu.dot_dimension_numbers<[1], [0], [0], [1], [0, 0, 1, 1], [], []>} : vector<8x32xbf16>, vector<32x256xbf16>, vector<8x256xf32> -> vector<8x256xf32>
    %126 = vector.extract_strided_slice %125 {offsets = [0, 0], sizes = [8, 128], strides = [1, 1]} : vector<8x256xf32> to vector<8x128xf32>
    %127 = vector.extract_strided_slice %125 {offsets = [0, 128], sizes = [8, 128], strides = [1, 1]} : vector<8x256xf32> to vector<8x128xf32>
    %128 = arith.addf %127, %103 : vector<8x128xf32>
    %129 = arith.addf %128, %11 : vector<8x128xf32>
    %130 = arith.negf %129 : vector<8x128xf32>
    %131 = math.exp %130 : vector<8x128xf32>
    %cst_32 = arith.constant 1.000000e+00 : f32
    %132 = vector.broadcast %cst_32 : f32 to vector<8x128xf32>
    %133 = arith.addf %132, %131 : vector<8x128xf32>
    %134 = arith.divf %132, %133 : vector<8x128xf32>
    %135 = math.tanh %129 : vector<8x128xf32>
    %136 = vector.extract_strided_slice %134 {offsets = [0, 0], sizes = [8, 32], strides = [1, 1]} : vector<8x128xf32> to vector<8x32xf32>
    %137 = vector.extract_strided_slice %134 {offsets = [0, 32], sizes = [8, 32], strides = [1, 1]} : vector<8x128xf32> to vector<8x32xf32>
    %138 = vector.extract_strided_slice %135 {offsets = [0, 64], sizes = [8, 32], strides = [1, 1]} : vector<8x128xf32> to vector<8x32xf32>
    %139 = vector.extract_strided_slice %134 {offsets = [0, 96], sizes = [8, 32], strides = [1, 1]} : vector<8x128xf32> to vector<8x32xf32>
    %140 = arith.mulf %137, %97 : vector<8x32xf32>
    %141 = arith.mulf %136, %138 : vector<8x32xf32>
    %142 = arith.addf %140, %141 : vector<8x32xf32>
    %143 = math.tanh %142 : vector<8x32xf32>
    %144 = arith.mulf %139, %143 : vector<8x32xf32>
    %145 = arith.index_cast %105 : i32 to index
    %c0_33 = arith.constant 0 : index
    %146 = vector.load %arg11[%145, %c0_33] : memref<64x32xf32, #tpu.memory_space<vmem>>, vector<8x32xf32>
    tpu.vector_store %arg11[%145, %c0_33], %144 {strides = array<i32>} : memref<64x32xf32, #tpu.memory_space<vmem>>, vector<8x32xf32>,
    %147 = arith.truncf %144 : vector<8x32xf32> to vector<8x32xbf16>
    %cst_34 = arith.constant dense<0.000000e+00> : vector<8x128xf32>
    %148 = tpu.matmul %147, %8, %cst_34 {dimension_numbers = #tpu.dot_dimension_numbers<[1], [0], [0], [1], [0, 0, 1, 1], [], []>} : vector<8x32xbf16>, vector<32x128xbf16>, vector<8x128xf32> -> vector<8x128xf32>
    %c3_i32 = arith.constant 3 : i32
    %c8_i32_35 = arith.constant 8 : i32
    %149 = arith.muli %c3_i32, %c8_i32_35 : i32
    %150 = tpu.assume_multiple %149, 8 : i32
    %151 = arith.index_cast %150 : i32 to index
    %c0_36 = arith.constant 0 : index
    %152 = vector.load %arg10[%151, %c0_36] : memref<64x128xf32, #tpu.memory_space<vmem>>, vector<8x128xf32>
    %153 = arith.addf %152, %126 : vector<8x128xf32>
    %154 = arith.negf %153 : vector<8x128xf32>
    %155 = math.exp %154 : vector<8x128xf32>
    %cst_37 = arith.constant 1.000000e+00 : f32
    %156 = vector.broadcast %cst_37 : f32 to vector<8x128xf32>
    %157 = arith.addf %156, %155 : vector<8x128xf32>
    %158 = arith.divf %156, %157 : vector<8x128xf32>
    %159 = math.tanh %153 : vector<8x128xf32>
    %160 = vector.extract_strided_slice %158 {offsets = [0, 0], sizes = [8, 32], strides = [1, 1]} : vector<8x128xf32> to vector<8x32xf32>
    %161 = vector.extract_strided_slice %158 {offsets = [0, 32], sizes = [8, 32], strides = [1, 1]} : vector<8x128xf32> to vector<8x32xf32>
    %162 = vector.extract_strided_slice %159 {offsets = [0, 64], sizes = [8, 32], strides = [1, 1]} : vector<8x128xf32> to vector<8x32xf32>
    %163 = vector.extract_strided_slice %158 {offsets = [0, 96], sizes = [8, 32], strides = [1, 1]} : vector<8x128xf32> to vector<8x32xf32>
    %164 = arith.mulf %161, %121 : vector<8x32xf32>
    %165 = arith.mulf %160, %162 : vector<8x32xf32>
    %166 = arith.addf %164, %165 : vector<8x32xf32>
    %167 = math.tanh %166 : vector<8x32xf32>
    %168 = arith.mulf %163, %167 : vector<8x32xf32>
    %169 = arith.truncf %168 : vector<8x32xf32> to vector<8x32xbf16>
    %cst_38 = arith.constant dense<0.000000e+00> : vector<8x256xf32>
    %170 = tpu.matmul %169, %7, %cst_38 {dimension_numbers = #tpu.dot_dimension_numbers<[1], [0], [0], [1], [0, 0, 1, 1], [], []>} : vector<8x32xbf16>, vector<32x256xbf16>, vector<8x256xf32> -> vector<8x256xf32>
    %171 = vector.extract_strided_slice %170 {offsets = [0, 0], sizes = [8, 128], strides = [1, 1]} : vector<8x256xf32> to vector<8x128xf32>
    %172 = vector.extract_strided_slice %170 {offsets = [0, 128], sizes = [8, 128], strides = [1, 1]} : vector<8x256xf32> to vector<8x128xf32>
    %173 = arith.addf %172, %148 : vector<8x128xf32>
    %174 = arith.addf %173, %11 : vector<8x128xf32>
    %175 = arith.negf %174 : vector<8x128xf32>
    %176 = math.exp %175 : vector<8x128xf32>
    %cst_39 = arith.constant 1.000000e+00 : f32
    %177 = vector.broadcast %cst_39 : f32 to vector<8x128xf32>
    %178 = arith.addf %177, %176 : vector<8x128xf32>
    %179 = arith.divf %177, %178 : vector<8x128xf32>
    %180 = math.tanh %174 : vector<8x128xf32>
    %181 = vector.extract_strided_slice %179 {offsets = [0, 0], sizes = [8, 32], strides = [1, 1]} : vector<8x128xf32> to vector<8x32xf32>
    %182 = vector.extract_strided_slice %179 {offsets = [0, 32], sizes = [8, 32], strides = [1, 1]} : vector<8x128xf32> to vector<8x32xf32>
    %183 = vector.extract_strided_slice %180 {offsets = [0, 64], sizes = [8, 32], strides = [1, 1]} : vector<8x128xf32> to vector<8x32xf32>
    %184 = vector.extract_strided_slice %179 {offsets = [0, 96], sizes = [8, 32], strides = [1, 1]} : vector<8x128xf32> to vector<8x32xf32>
    %185 = arith.mulf %182, %142 : vector<8x32xf32>
    %186 = arith.mulf %181, %183 : vector<8x32xf32>
    %187 = arith.addf %185, %186 : vector<8x32xf32>
    %188 = math.tanh %187 : vector<8x32xf32>
    %189 = arith.mulf %184, %188 : vector<8x32xf32>
    %190 = arith.index_cast %150 : i32 to index
    %c0_40 = arith.constant 0 : index
    %191 = vector.load %arg11[%190, %c0_40] : memref<64x32xf32, #tpu.memory_space<vmem>>, vector<8x32xf32>
    tpu.vector_store %arg11[%190, %c0_40], %189 {strides = array<i32>} : memref<64x32xf32, #tpu.memory_space<vmem>>, vector<8x32xf32>,
    %192 = arith.truncf %189 : vector<8x32xf32> to vector<8x32xbf16>
    %cst_41 = arith.constant dense<0.000000e+00> : vector<8x128xf32>
    %193 = tpu.matmul %192, %8, %cst_41 {dimension_numbers = #tpu.dot_dimension_numbers<[1], [0], [0], [1], [0, 0, 1, 1], [], []>} : vector<8x32xbf16>, vector<32x128xbf16>, vector<8x128xf32> -> vector<8x128xf32>
    %c4_i32 = arith.constant 4 : i32
    %c8_i32_42 = arith.constant 8 : i32
    %194 = arith.muli %c4_i32, %c8_i32_42 : i32
    %195 = tpu.assume_multiple %194, 8 : i32
    %196 = arith.index_cast %195 : i32 to index
    %c0_43 = arith.constant 0 : index
    %197 = vector.load %arg10[%196, %c0_43] : memref<64x128xf32, #tpu.memory_space<vmem>>, vector<8x128xf32>
    %198 = arith.addf %197, %171 : vector<8x128xf32>
    %199 = arith.negf %198 : vector<8x128xf32>
    %200 = math.exp %199 : vector<8x128xf32>
    %cst_44 = arith.constant 1.000000e+00 : f32
    %201 = vector.broadcast %cst_44 : f32 to vector<8x128xf32>
    %202 = arith.addf %201, %200 : vector<8x128xf32>
    %203 = arith.divf %201, %202 : vector<8x128xf32>
    %204 = math.tanh %198 : vector<8x128xf32>
    %205 = vector.extract_strided_slice %203 {offsets = [0, 0], sizes = [8, 32], strides = [1, 1]} : vector<8x128xf32> to vector<8x32xf32>
    %206 = vector.extract_strided_slice %203 {offsets = [0, 32], sizes = [8, 32], strides = [1, 1]} : vector<8x128xf32> to vector<8x32xf32>
    %207 = vector.extract_strided_slice %204 {offsets = [0, 64], sizes = [8, 32], strides = [1, 1]} : vector<8x128xf32> to vector<8x32xf32>
    %208 = vector.extract_strided_slice %203 {offsets = [0, 96], sizes = [8, 32], strides = [1, 1]} : vector<8x128xf32> to vector<8x32xf32>
    %209 = arith.mulf %206, %166 : vector<8x32xf32>
    %210 = arith.mulf %205, %207 : vector<8x32xf32>
    %211 = arith.addf %209, %210 : vector<8x32xf32>
    %212 = math.tanh %211 : vector<8x32xf32>
    %213 = arith.mulf %208, %212 : vector<8x32xf32>
    %214 = arith.truncf %213 : vector<8x32xf32> to vector<8x32xbf16>
    %cst_45 = arith.constant dense<0.000000e+00> : vector<8x256xf32>
    %215 = tpu.matmul %214, %7, %cst_45 {dimension_numbers = #tpu.dot_dimension_numbers<[1], [0], [0], [1], [0, 0, 1, 1], [], []>} : vector<8x32xbf16>, vector<32x256xbf16>, vector<8x256xf32> -> vector<8x256xf32>
    %216 = vector.extract_strided_slice %215 {offsets = [0, 0], sizes = [8, 128], strides = [1, 1]} : vector<8x256xf32> to vector<8x128xf32>
    %217 = vector.extract_strided_slice %215 {offsets = [0, 128], sizes = [8, 128], strides = [1, 1]} : vector<8x256xf32> to vector<8x128xf32>
    %218 = arith.addf %217, %193 : vector<8x128xf32>
    %219 = arith.addf %218, %11 : vector<8x128xf32>
    %220 = arith.negf %219 : vector<8x128xf32>
    %221 = math.exp %220 : vector<8x128xf32>
    %cst_46 = arith.constant 1.000000e+00 : f32
    %222 = vector.broadcast %cst_46 : f32 to vector<8x128xf32>
    %223 = arith.addf %222, %221 : vector<8x128xf32>
    %224 = arith.divf %222, %223 : vector<8x128xf32>
    %225 = math.tanh %219 : vector<8x128xf32>
    %226 = vector.extract_strided_slice %224 {offsets = [0, 0], sizes = [8, 32], strides = [1, 1]} : vector<8x128xf32> to vector<8x32xf32>
    %227 = vector.extract_strided_slice %224 {offsets = [0, 32], sizes = [8, 32], strides = [1, 1]} : vector<8x128xf32> to vector<8x32xf32>
    %228 = vector.extract_strided_slice %225 {offsets = [0, 64], sizes = [8, 32], strides = [1, 1]} : vector<8x128xf32> to vector<8x32xf32>
    %229 = vector.extract_strided_slice %224 {offsets = [0, 96], sizes = [8, 32], strides = [1, 1]} : vector<8x128xf32> to vector<8x32xf32>
    %230 = arith.mulf %227, %187 : vector<8x32xf32>
    %231 = arith.mulf %226, %228 : vector<8x32xf32>
    %232 = arith.addf %230, %231 : vector<8x32xf32>
    %233 = math.tanh %232 : vector<8x32xf32>
    %234 = arith.mulf %229, %233 : vector<8x32xf32>
    %235 = arith.index_cast %195 : i32 to index
    %c0_47 = arith.constant 0 : index
    %236 = vector.load %arg11[%235, %c0_47] : memref<64x32xf32, #tpu.memory_space<vmem>>, vector<8x32xf32>
    tpu.vector_store %arg11[%235, %c0_47], %234 {strides = array<i32>} : memref<64x32xf32, #tpu.memory_space<vmem>>, vector<8x32xf32>,
    %237 = arith.truncf %234 : vector<8x32xf32> to vector<8x32xbf16>
    %cst_48 = arith.constant dense<0.000000e+00> : vector<8x128xf32>
    %238 = tpu.matmul %237, %8, %cst_48 {dimension_numbers = #tpu.dot_dimension_numbers<[1], [0], [0], [1], [0, 0, 1, 1], [], []>} : vector<8x32xbf16>, vector<32x128xbf16>, vector<8x128xf32> -> vector<8x128xf32>
    %c5_i32 = arith.constant 5 : i32
    %c8_i32_49 = arith.constant 8 : i32
    %239 = arith.muli %c5_i32, %c8_i32_49 : i32
    %240 = tpu.assume_multiple %239, 8 : i32
    %241 = arith.index_cast %240 : i32 to index
    %c0_50 = arith.constant 0 : index
    %242 = vector.load %arg10[%241, %c0_50] : memref<64x128xf32, #tpu.memory_space<vmem>>, vector<8x128xf32>
    %243 = arith.addf %242, %216 : vector<8x128xf32>
    %244 = arith.negf %243 : vector<8x128xf32>
    %245 = math.exp %244 : vector<8x128xf32>
    %cst_51 = arith.constant 1.000000e+00 : f32
    %246 = vector.broadcast %cst_51 : f32 to vector<8x128xf32>
    %247 = arith.addf %246, %245 : vector<8x128xf32>
    %248 = arith.divf %246, %247 : vector<8x128xf32>
    %249 = math.tanh %243 : vector<8x128xf32>
    %250 = vector.extract_strided_slice %248 {offsets = [0, 0], sizes = [8, 32], strides = [1, 1]} : vector<8x128xf32> to vector<8x32xf32>
    %251 = vector.extract_strided_slice %248 {offsets = [0, 32], sizes = [8, 32], strides = [1, 1]} : vector<8x128xf32> to vector<8x32xf32>
    %252 = vector.extract_strided_slice %249 {offsets = [0, 64], sizes = [8, 32], strides = [1, 1]} : vector<8x128xf32> to vector<8x32xf32>
    %253 = vector.extract_strided_slice %248 {offsets = [0, 96], sizes = [8, 32], strides = [1, 1]} : vector<8x128xf32> to vector<8x32xf32>
    %254 = arith.mulf %251, %211 : vector<8x32xf32>
    %255 = arith.mulf %250, %252 : vector<8x32xf32>
    %256 = arith.addf %254, %255 : vector<8x32xf32>
    %257 = math.tanh %256 : vector<8x32xf32>
    %258 = arith.mulf %253, %257 : vector<8x32xf32>
    %259 = arith.truncf %258 : vector<8x32xf32> to vector<8x32xbf16>
    %cst_52 = arith.constant dense<0.000000e+00> : vector<8x256xf32>
    %260 = tpu.matmul %259, %7, %cst_52 {dimension_numbers = #tpu.dot_dimension_numbers<[1], [0], [0], [1], [0, 0, 1, 1], [], []>} : vector<8x32xbf16>, vector<32x256xbf16>, vector<8x256xf32> -> vector<8x256xf32>
    %261 = vector.extract_strided_slice %260 {offsets = [0, 0], sizes = [8, 128], strides = [1, 1]} : vector<8x256xf32> to vector<8x128xf32>
    %262 = vector.extract_strided_slice %260 {offsets = [0, 128], sizes = [8, 128], strides = [1, 1]} : vector<8x256xf32> to vector<8x128xf32>
    %263 = arith.addf %262, %238 : vector<8x128xf32>
    %264 = arith.addf %263, %11 : vector<8x128xf32>
    %265 = arith.negf %264 : vector<8x128xf32>
    %266 = math.exp %265 : vector<8x128xf32>
    %cst_53 = arith.constant 1.000000e+00 : f32
    %267 = vector.broadcast %cst_53 : f32 to vector<8x128xf32>
    %268 = arith.addf %267, %266 : vector<8x128xf32>
    %269 = arith.divf %267, %268 : vector<8x128xf32>
    %270 = math.tanh %264 : vector<8x128xf32>
    %271 = vector.extract_strided_slice %269 {offsets = [0, 0], sizes = [8, 32], strides = [1, 1]} : vector<8x128xf32> to vector<8x32xf32>
    %272 = vector.extract_strided_slice %269 {offsets = [0, 32], sizes = [8, 32], strides = [1, 1]} : vector<8x128xf32> to vector<8x32xf32>
    %273 = vector.extract_strided_slice %270 {offsets = [0, 64], sizes = [8, 32], strides = [1, 1]} : vector<8x128xf32> to vector<8x32xf32>
    %274 = vector.extract_strided_slice %269 {offsets = [0, 96], sizes = [8, 32], strides = [1, 1]} : vector<8x128xf32> to vector<8x32xf32>
    %275 = arith.mulf %272, %232 : vector<8x32xf32>
    %276 = arith.mulf %271, %273 : vector<8x32xf32>
    %277 = arith.addf %275, %276 : vector<8x32xf32>
    %278 = math.tanh %277 : vector<8x32xf32>
    %279 = arith.mulf %274, %278 : vector<8x32xf32>
    %280 = arith.index_cast %240 : i32 to index
    %c0_54 = arith.constant 0 : index
    %281 = vector.load %arg11[%280, %c0_54] : memref<64x32xf32, #tpu.memory_space<vmem>>, vector<8x32xf32>
    tpu.vector_store %arg11[%280, %c0_54], %279 {strides = array<i32>} : memref<64x32xf32, #tpu.memory_space<vmem>>, vector<8x32xf32>,
    %282 = arith.truncf %279 : vector<8x32xf32> to vector<8x32xbf16>
    %cst_55 = arith.constant dense<0.000000e+00> : vector<8x128xf32>
    %283 = tpu.matmul %282, %8, %cst_55 {dimension_numbers = #tpu.dot_dimension_numbers<[1], [0], [0], [1], [0, 0, 1, 1], [], []>} : vector<8x32xbf16>, vector<32x128xbf16>, vector<8x128xf32> -> vector<8x128xf32>
    %c6_i32 = arith.constant 6 : i32
    %c8_i32_56 = arith.constant 8 : i32
    %284 = arith.muli %c6_i32, %c8_i32_56 : i32
    %285 = tpu.assume_multiple %284, 8 : i32
    %286 = arith.index_cast %285 : i32 to index
    %c0_57 = arith.constant 0 : index
    %287 = vector.load %arg10[%286, %c0_57] : memref<64x128xf32, #tpu.memory_space<vmem>>, vector<8x128xf32>
    %288 = arith.addf %287, %261 : vector<8x128xf32>
    %289 = arith.negf %288 : vector<8x128xf32>
    %290 = math.exp %289 : vector<8x128xf32>
    %cst_58 = arith.constant 1.000000e+00 : f32
    %291 = vector.broadcast %cst_58 : f32 to vector<8x128xf32>
    %292 = arith.addf %291, %290 : vector<8x128xf32>
    %293 = arith.divf %291, %292 : vector<8x128xf32>
    %294 = math.tanh %288 : vector<8x128xf32>
    %295 = vector.extract_strided_slice %293 {offsets = [0, 0], sizes = [8, 32], strides = [1, 1]} : vector<8x128xf32> to vector<8x32xf32>
    %296 = vector.extract_strided_slice %293 {offsets = [0, 32], sizes = [8, 32], strides = [1, 1]} : vector<8x128xf32> to vector<8x32xf32>
    %297 = vector.extract_strided_slice %294 {offsets = [0, 64], sizes = [8, 32], strides = [1, 1]} : vector<8x128xf32> to vector<8x32xf32>
    %298 = vector.extract_strided_slice %293 {offsets = [0, 96], sizes = [8, 32], strides = [1, 1]} : vector<8x128xf32> to vector<8x32xf32>
    %299 = arith.mulf %296, %256 : vector<8x32xf32>
    %300 = arith.mulf %295, %297 : vector<8x32xf32>
    %301 = arith.addf %299, %300 : vector<8x32xf32>
    %302 = math.tanh %301 : vector<8x32xf32>
    %303 = arith.mulf %298, %302 : vector<8x32xf32>
    %304 = arith.truncf %303 : vector<8x32xf32> to vector<8x32xbf16>
    %cst_59 = arith.constant dense<0.000000e+00> : vector<8x256xf32>
    %305 = tpu.matmul %304, %7, %cst_59 {dimension_numbers = #tpu.dot_dimension_numbers<[1], [0], [0], [1], [0, 0, 1, 1], [], []>} : vector<8x32xbf16>, vector<32x256xbf16>, vector<8x256xf32> -> vector<8x256xf32>
    %306 = vector.extract_strided_slice %305 {offsets = [0, 0], sizes = [8, 128], strides = [1, 1]} : vector<8x256xf32> to vector<8x128xf32>
    %307 = vector.extract_strided_slice %305 {offsets = [0, 128], sizes = [8, 128], strides = [1, 1]} : vector<8x256xf32> to vector<8x128xf32>
    %308 = arith.addf %307, %283 : vector<8x128xf32>
    %309 = arith.addf %308, %11 : vector<8x128xf32>
    %310 = arith.negf %309 : vector<8x128xf32>
    %311 = math.exp %310 : vector<8x128xf32>
    %cst_60 = arith.constant 1.000000e+00 : f32
    %312 = vector.broadcast %cst_60 : f32 to vector<8x128xf32>
    %313 = arith.addf %312, %311 : vector<8x128xf32>
    %314 = arith.divf %312, %313 : vector<8x128xf32>
    %315 = math.tanh %309 : vector<8x128xf32>
    %316 = vector.extract_strided_slice %314 {offsets = [0, 0], sizes = [8, 32], strides = [1, 1]} : vector<8x128xf32> to vector<8x32xf32>
    %317 = vector.extract_strided_slice %314 {offsets = [0, 32], sizes = [8, 32], strides = [1, 1]} : vector<8x128xf32> to vector<8x32xf32>
    %318 = vector.extract_strided_slice %315 {offsets = [0, 64], sizes = [8, 32], strides = [1, 1]} : vector<8x128xf32> to vector<8x32xf32>
    %319 = vector.extract_strided_slice %314 {offsets = [0, 96], sizes = [8, 32], strides = [1, 1]} : vector<8x128xf32> to vector<8x32xf32>
    %320 = arith.mulf %317, %277 : vector<8x32xf32>
    %321 = arith.mulf %316, %318 : vector<8x32xf32>
    %322 = arith.addf %320, %321 : vector<8x32xf32>
    %323 = math.tanh %322 : vector<8x32xf32>
    %324 = arith.mulf %319, %323 : vector<8x32xf32>
    %325 = arith.index_cast %285 : i32 to index
    %c0_61 = arith.constant 0 : index
    %326 = vector.load %arg11[%325, %c0_61] : memref<64x32xf32, #tpu.memory_space<vmem>>, vector<8x32xf32>
    tpu.vector_store %arg11[%325, %c0_61], %324 {strides = array<i32>} : memref<64x32xf32, #tpu.memory_space<vmem>>, vector<8x32xf32>,
    %327 = arith.truncf %324 : vector<8x32xf32> to vector<8x32xbf16>
    %cst_62 = arith.constant dense<0.000000e+00> : vector<8x128xf32>
    %328 = tpu.matmul %327, %8, %cst_62 {dimension_numbers = #tpu.dot_dimension_numbers<[1], [0], [0], [1], [0, 0, 1, 1], [], []>} : vector<8x32xbf16>, vector<32x128xbf16>, vector<8x128xf32> -> vector<8x128xf32>
    %c7_i32 = arith.constant 7 : i32
    %c8_i32_63 = arith.constant 8 : i32
    %329 = arith.muli %c7_i32, %c8_i32_63 : i32
    %330 = tpu.assume_multiple %329, 8 : i32
    %331 = arith.index_cast %330 : i32 to index
    %c0_64 = arith.constant 0 : index
    %332 = vector.load %arg10[%331, %c0_64] : memref<64x128xf32, #tpu.memory_space<vmem>>, vector<8x128xf32>
    %333 = arith.addf %332, %306 : vector<8x128xf32>
    %334 = arith.negf %333 : vector<8x128xf32>
    %335 = math.exp %334 : vector<8x128xf32>
    %cst_65 = arith.constant 1.000000e+00 : f32
    %336 = vector.broadcast %cst_65 : f32 to vector<8x128xf32>
    %337 = arith.addf %336, %335 : vector<8x128xf32>
    %338 = arith.divf %336, %337 : vector<8x128xf32>
    %339 = math.tanh %333 : vector<8x128xf32>
    %340 = vector.extract_strided_slice %338 {offsets = [0, 0], sizes = [8, 32], strides = [1, 1]} : vector<8x128xf32> to vector<8x32xf32>
    %341 = vector.extract_strided_slice %338 {offsets = [0, 32], sizes = [8, 32], strides = [1, 1]} : vector<8x128xf32> to vector<8x32xf32>
    %342 = vector.extract_strided_slice %339 {offsets = [0, 64], sizes = [8, 32], strides = [1, 1]} : vector<8x128xf32> to vector<8x32xf32>
    %343 = vector.extract_strided_slice %338 {offsets = [0, 96], sizes = [8, 32], strides = [1, 1]} : vector<8x128xf32> to vector<8x32xf32>
    %344 = arith.mulf %341, %301 : vector<8x32xf32>
    %345 = arith.mulf %340, %342 : vector<8x32xf32>
    %346 = arith.addf %344, %345 : vector<8x32xf32>
    %347 = math.tanh %346 : vector<8x32xf32>
    %348 = arith.mulf %343, %347 : vector<8x32xf32>
    %349 = arith.truncf %348 : vector<8x32xf32> to vector<8x32xbf16>
    %cst_66 = arith.constant dense<0.000000e+00> : vector<8x256xf32>
    %350 = tpu.matmul %349, %7, %cst_66 {dimension_numbers = #tpu.dot_dimension_numbers<[1], [0], [0], [1], [0, 0, 1, 1], [], []>} : vector<8x32xbf16>, vector<32x256xbf16>, vector<8x256xf32> -> vector<8x256xf32>
    %351 = vector.extract_strided_slice %350 {offsets = [0, 0], sizes = [8, 128], strides = [1, 1]} : vector<8x256xf32> to vector<8x128xf32>
    %352 = vector.extract_strided_slice %350 {offsets = [0, 128], sizes = [8, 128], strides = [1, 1]} : vector<8x256xf32> to vector<8x128xf32>
    %353 = arith.addf %352, %328 : vector<8x128xf32>
    %354 = arith.addf %353, %11 : vector<8x128xf32>
    %355 = arith.negf %354 : vector<8x128xf32>
    %356 = math.exp %355 : vector<8x128xf32>
    %cst_67 = arith.constant 1.000000e+00 : f32
    %357 = vector.broadcast %cst_67 : f32 to vector<8x128xf32>
    %358 = arith.addf %357, %356 : vector<8x128xf32>
    %359 = arith.divf %357, %358 : vector<8x128xf32>
    %360 = math.tanh %354 : vector<8x128xf32>
    %361 = vector.extract_strided_slice %359 {offsets = [0, 0], sizes = [8, 32], strides = [1, 1]} : vector<8x128xf32> to vector<8x32xf32>
    %362 = vector.extract_strided_slice %359 {offsets = [0, 32], sizes = [8, 32], strides = [1, 1]} : vector<8x128xf32> to vector<8x32xf32>
    %363 = vector.extract_strided_slice %360 {offsets = [0, 64], sizes = [8, 32], strides = [1, 1]} : vector<8x128xf32> to vector<8x32xf32>
    %364 = vector.extract_strided_slice %359 {offsets = [0, 96], sizes = [8, 32], strides = [1, 1]} : vector<8x128xf32> to vector<8x32xf32>
    %365 = arith.mulf %362, %322 : vector<8x32xf32>
    %366 = arith.mulf %361, %363 : vector<8x32xf32>
    %367 = arith.addf %365, %366 : vector<8x32xf32>
    %368 = math.tanh %367 : vector<8x32xf32>
    %369 = arith.mulf %364, %368 : vector<8x32xf32>
    %370 = arith.index_cast %330 : i32 to index
    %c0_68 = arith.constant 0 : index
    %371 = vector.load %arg11[%370, %c0_68] : memref<64x32xf32, #tpu.memory_space<vmem>>, vector<8x32xf32>
    tpu.vector_store %arg11[%370, %c0_68], %369 {strides = array<i32>} : memref<64x32xf32, #tpu.memory_space<vmem>>, vector<8x32xf32>,
    %372 = arith.truncf %369 : vector<8x32xf32> to vector<8x32xbf16>
    %cst_69 = arith.constant dense<0.000000e+00> : vector<8x128xf32>
    %373 = tpu.matmul %372, %8, %cst_69 {dimension_numbers = #tpu.dot_dimension_numbers<[1], [0], [0], [1], [0, 0, 1, 1], [], []>} : vector<8x32xbf16>, vector<32x128xbf16>, vector<8x128xf32> -> vector<8x128xf32>
    %c8_i32_70 = arith.constant 8 : i32
    %c0_71 = arith.constant 0 : index
    %c0_72 = arith.constant 0 : index
    %374 = vector.load %arg11[%c0_71, %c0_72] : memref<64x32xf32, #tpu.memory_space<vmem>>, vector<64x32xf32>
    %375 = arith.truncf %374 : vector<64x32xf32> to vector<64x32xbf16>
    %c0_73 = arith.constant 0 : index
    %c0_74 = arith.constant 0 : index
    %376 = vector.load %arg7[%c0_73, %c0_74] : memref<32x128xbf16, #tpu.memory_space<vmem>>, vector<32x128xbf16>
    %cst_75 = arith.constant dense<0.000000e+00> : vector<64x128xf32>
    %377 = tpu.matmul %375, %376, %cst_75 {dimension_numbers = #tpu.dot_dimension_numbers<[1], [0], [0], [1], [0, 0, 1, 1], [], []>} : vector<64x32xbf16>, vector<32x128xbf16>, vector<64x128xf32> -> vector<64x128xf32>
    %c0_76 = arith.constant 0 : index
    %c0_77 = arith.constant 0 : index
    %378 = vector.load %arg8[%c0_76, %c0_77] : memref<1x128xf32, #tpu.memory_space<vmem>>, vector<1x128xf32>
    %379 = vector.broadcast %378 : vector<1x128xf32> to vector<64x128xf32>
    %380 = arith.addf %377, %379 : vector<64x128xf32>
    %c0_78 = arith.constant 0 : index
    %c0_79 = arith.constant 0 : index
    %381 = vector.load %arg9[%c0_78, %c0_79] : memref<64x128xf32, #tpu.memory_space<vmem>>, vector<64x128xf32>
    tpu.vector_store %arg9[%c0_78, %c0_79], %380 {strides = array<i32>} : memref<64x128xf32, #tpu.memory_space<vmem>>, vector<64x128xf32>,
    return
  }
  func.func @transform_0(%arg0: i32) -> (i32, i32) {
    %c0_i32 = arith.constant 0 : i32
    %c0_i32_0 = arith.constant 0 : i32
    %c0_i32_1 = arith.constant 0 : i32
    return %c0_i32, %c0_i32_0 : i32, i32
  }
  func.func @transform_1(%arg0: i32) -> (i32, i32) {
    %c0_i32 = arith.constant 0 : i32
    %c0_i32_0 = arith.constant 0 : i32
    %c0_i32_1 = arith.constant 0 : i32
    return %c0_i32, %c0_i32_0 : i32, i32
  }
  func.func @transform_2(%arg0: i32) -> (i32, i32) {
    %c0_i32 = arith.constant 0 : i32
    %c0_i32_0 = arith.constant 0 : i32
    %c0_i32_1 = arith.constant 0 : i32
    return %c0_i32, %c0_i32_0 : i32, i32
  }
  func.func @transform_3(%arg0: i32) -> (i32, i32) {
    %c0_i32 = arith.constant 0 : i32
    %c0_i32_0 = arith.constant 0 : i32
    %c0_i32_1 = arith.constant 0 : i32
    return %c0_i32, %c0_i32_0 : i32, i32
  }
  func.func @transform_4(%arg0: i32) -> (i32, i32) {
    %c0_i32 = arith.constant 0 : i32
    %c0_i32_0 = arith.constant 0 : i32
    %c0_i32_1 = arith.constant 0 : i32
    return %c0_i32, %c0_i32_0 : i32, i32
  }
  func.func @transform_5(%arg0: i32) -> (i32, i32) {
    %c0_i32 = arith.constant 0 : i32
    %c0_i32_0 = arith.constant 0 : i32
    %c0_i32_1 = arith.constant 0 : i32
    return %c0_i32, %c0_i32_0 : i32, i32
  }
  func.func @transform_6(%arg0: i32) -> (i32, i32) {
    %c0_i32 = arith.constant 0 : i32
    %c0_i32_0 = arith.constant 0 : i32
    %c0_i32_1 = arith.constant 0 : i32
    return %c0_i32, %c0_i32_0 : i32, i32
  }
  func.func @transform_7(%arg0: i32) -> (i32, i32) {
    %c0_i32 = arith.constant 0 : i32
    %c0_i32_0 = arith.constant 0 : i32
    %c0_i32_1 = arith.constant 0 : i32
    return %c0_i32, %c0_i32_0 : i32, i32
  }
  func.func @transform_8(%arg0: i32) -> (i32, i32) {
    %c0_i32 = arith.constant 0 : i32
    %c0_i32_0 = arith.constant 0 : i32
    %c0_i32_1 = arith.constant 0 : i32
    return %c0_i32, %c0_i32_0 : i32, i32
  }
}

</mosaic_0001>

<bundles_post_ra>
// kernel: lstm_crf_emissions.1
= control target key start
LH: loop header
LB: loop body
LE: loop exit
PB: predicated region body
PF: predicated region fallthrough
CT: control target
= control target key end

     0   :  { %vm78_vm0 = vcmask 261120   ;;  %s1579_s13 = smov 64   ;;  %s2000_s1 = inlined_call_operand.vmem [shape: bf16[32,128], index: 1, kind: input, shape index: {}]   ;;  %s2001_s2 = inlined_call_operand.vmem [shape: f32[1,128], index: 2, kind: input, shape index: {}]   ;;  %s2002_s0 = inlined_call_operand.vmem [shape: bf16[64,32], index: 0, kind: input, shape index: {}]   ;;  %s2003_s3 = inlined_call_operand.vmem [shape: bf16[32,256], index: 3, kind: input, shape index: {}]   ;;  %s2004_s5 = inlined_call_operand.vmem [shape: f32[1,128], index: 5, kind: input, shape index: {}]   ;;  %s2005_s4 = inlined_call_operand.vmem [shape: bf16[32,128], index: 4, kind: input, shape index: {}]   ;;  %s2006_s6 = inlined_call_operand.vmem [shape: bf16[32,128], index: 6, kind: input, shape index: {}]   ;;  %s2007_s7 = inlined_call_operand.vmem [shape: f32[1,128], index: 7, kind: input, shape index: {}]   ;;  %s2008_s8 = inlined_call_operand.vmem [shape: f32[64,128], index: 8, kind: output, shape index: {}]  }
   0x1   :  { %v1433_v0 = vld [vmem:[%s2000_s1 + $0x8] sm:$0xff]  ;;  %v1432_v1 = vld [vmem:[%s2000_s1] sm:$0xff]  ;;  %s1580_s1 = smov 32   ;;  %v1365_v26 = vld [vmem:[%s2003_s3 + $0x10] sm:$0xf] }
   0x2   :  { %97 = vmatpush.bf16.msra.mxu0 %v1433_v0  ;;  %v1428_v2 = vld [vmem:[%s2002_s0] sm:$0xff]  ;;  %v1437_v27 = vld [vmem:[%s2003_s3 + $0x14] sm:$0xf0]  ;;  %v1436_v28 = vld [vmem:[%s2003_s3 + $0x14] sm:$0xf] }
   0x3   :  { %v1639_v3 = vld [vmem:[%s2001_s2] ss:$0 sm:$0xff]  ;;  %v1657_v29 = vor.u32 %v1437_v27, %v1365_v26  ;;  %v1367_v30 = vld [vmem:[%s2003_s3 + $0x18] sm:$0xf0]  ;;  %v1435_v32 = vld [vmem:[%s2003_s3 + $0x4] sm:$0xf0] }
   0x4   :  { %v1357_v31 = vld [vmem:[%s2003_s3] sm:$0xf]  ;;  %v1668_v33 = vor.u32 %v1436_v28, %v1367_v30  ;;  %v1434_v34 = vld [vmem:[%s2003_s3 + $0x4] sm:$0xf]  ;;  %v1359_v35 = vld [vmem:[%s2003_s3 + $0x8] sm:$0xf0] }
   0x5   :  { %212 = vmatpush.bf16.msra.mxu1 %v1657_v29  ;;  %v1677_v36 = vor.u32 %v1435_v32, %v1357_v31  ;;  %v1681_v37 = vor.u32 %v1434_v34, %v1359_v35  ;;  %v1702_v43 = vld [vmem:[%s2004_s5] ss:$0 sm:$0xff]  ;;  %v1429_v34 = vld [vmem:[%s2002_s0 + $0x8] sm:$0xff] }
   0x6   :  { %98 = vmatpush.bf16.msra.mxu0 %v1432_v1  ;;  %225 = vmatpush.bf16.msra.mxu2 %v1668_v33  ;;  %v1736_v35 = vld [vmem:[%s2005_s4] sm:$0xff] }
   0x9   :  { %1350 = vmatmul.msk.bf16.vlgmr.msra.gmra.mxu0 %vm78_vm0, %v1428_v2  ;;  %213 = vmatpush.bf16.msra.mxu1 %v1677_v36 }
   0xa   :  { %775 = vmatpush.bf16.msrb.mxu0 %v1657_v29  ;;  %226 = vmatpush.bf16.msra.mxu2 %v1681_v37 }
   0xd   :  { %361 = vmatpush.bf16.msrb.mxu1 %v1657_v29 }
   0xe   :  { %776 = vmatpush.bf16.msrb.mxu0 %v1677_v36  ;;  %374 = vmatpush.bf16.msrb.mxu2 %v1668_v33 }
  0x11   :  { %362 = vmatpush.bf16.msrb.mxu1 %v1677_v36 }
  0x12   :  { %926 = vmatpush.bf16.msra.mxu0 %v1668_v33  ;;  %375 = vmatpush.bf16.msrb.mxu2 %v1681_v37 }
  0x16   :  { %927 = vmatpush.bf16.msra.mxu0 %v1681_v37 }
  0x19   :  { %1351 = vmatmul.msk.bf16.gmra.mxu0 %vm78_vm0, %v1429_v34 }
  0x86   :  { %v100_v4 = vpop.f32.mrf.mxu0 }
  0x87   :  { %v101_v5 = vadd.f32 %v1639_v3, %v100_v4 }
  0x89   :  { %1449 = vtanh.f32 %v101_v5  ;;  %v1354_v7 = vmul.f32 -1.442695, %v101_v5 }
  0x8b   :  { %1451 = vpow2.f32 %v1354_v7 }
  0x8e   :  { %v102_v46 = vpop.f32.mrf.mxu0 }
  0x8f   :  { %v1450_v6 = vpop.eup %1449  ;;  %v103_v48 = vadd.f32 %v1639_v3, %v102_v46 }
  0x90   :  { %164 = vrot.lane.b32.xlu0 %v1450_v6, %s1579_s13 }
  0x91   :  { %v1452_v8 = vpop.eup %1451 }
  0x92   :  { %v145_v9 = vadd.f32 1.0, %v1452_v8 }
  0x94   :  { %1453 = vrcp.f32 %v145_v9  ;;  %v157_v15 = vand.u32 2147483648, %v145_v9  ;;  %vm151_vm2 = vweird.f32 %v145_v9  ;;  %v155_v16 = vand.u32 2147483647, %v145_v9 }
  0x96   :  { %v158_v18 = vor.u32 1.1754944e-38, %v157_v15  ;;  %vm156_vm4 = vcmp.eq.f32.partialorder %v155_v16, 8.507059e+37 }
  0x9a   :  { %v1454_v10 = vpop.eup %1453 }
  0x9b   :  { %v147_v11 = vmul.f32 %v1454_v10, %v145_v9  ;;  %vm152_vm1 = vweird.f32 %v1454_v10 }
  0x9c   :  { %vm153_vm3 = vmor %vm151_vm2, %vm152_vm1 }
  0x9d   :  { %v148_v12 = vsub.f32 1.0, %v147_v11 }
  0x9f   :  { %v149_v13 = vmul.f32 %v1454_v10, %v148_v12 }
  0xa1   :  { %v150_v14 = vadd.f32 %v1454_v10, %v149_v13 }
  0xa3   :  { %v154_v17 = vsel %vm153_vm3, %v1454_v10, %v150_v14 }
  0xa4   :  { %v159_v20 = vsel %vm156_vm4, %v158_v18, %v154_v17 }
  0xa5   :  { %v162_v22 = vmul.f32 0.0, %v159_v20 }
 0x102   :  { %v165_v19 = vpop.permute.xlu0 %164 }
 0x103   :  { %v167_v21 = vmul.f32 %v165_v19, %v159_v20 }
 0x105   :  { %169 = vrot.lane.b32.xlu0 %v167_v21, %s1580_s1 }
 0x177   :  { %v170_v23 = vpop.permute.xlu0 %169 }
 0x178   :  { %v1644_v24 = vadd.f32 %v170_v23, %v162_v22 }
 0x17a   :  { %1455 = vtanh.f32 %v1644_v24 }
 0x180   :  { %v1456_v25 = vpop.eup %1455 }
 0x181   :  { %175 = vrot.lane.b32.xlu1 %v1456_v25, %s1579_s13 }
 0x1f3   :  { %v176_v38 = vpop.permute.xlu1 %175 }
 0x1f4   :  { %v178_v39 = vmul.f32 %v176_v38, %v159_v20 }
 0x1f6   :  { %v179_v40 = vpack.c.bf16 %v178_v39, %v178_v39 }
 0x1f8   :  { %181 = vrot.lane.b32.xlu1 %v179_v40, %s1580_s1 }
 0x26a   :  { %v182_v41 = vpop.permute.xlu1 %181 }
 0x26b   :  { %1371 = vmatmul.msk.bf16.vlgmr.msra.gmra.mxu1 %vm78_vm0, %v182_v41  ;;  %1372 = vmatmul.msk.bf16.vlgmr.msra.gmra.mxu2 %vm78_vm0, %v182_v41 }
 0x26c   :  { %499 = vmatpush.bf16.msra.mxu1 %v1657_v29  ;;  %512 = vmatpush.bf16.msra.mxu2 %v1668_v33 }
 0x270   :  { %500 = vmatpush.bf16.msra.mxu1 %v1677_v36  ;;  %513 = vmatpush.bf16.msra.mxu2 %v1681_v37 }
 0x2e8   :  { %v215_v42 = vpop.f32.mrf.mxu1 }
 0x2e9   :  { %v310_v49 = vadd.f32 %v215_v42, %v103_v48 }
 0x2eb   :  { %v1383_v54 = vmul.f32 -1.442695, %v310_v49 }
 0x2ee   :  { %v228_v44 = vpop.f32.mrf.mxu2 }
 0x2ef   :  { %v233_v45 = vadd.f32 %v1702_v43, %v228_v44  ;;  %v105_v44 = vpop.f32.mrf.mxu0 }
 0x2f0   :  { %v217_v47 = vpop.f32.mrf.mxu1 }
 0x2f1   :  { %1457 = vtanh.f32 %v233_v45  ;;  %v1373_v53 = vmul.f32 -1.442695, %v233_v45  ;;  %v106_v45 = vadd.f32 %v1639_v3, %v105_v44 }
 0x2f2   :  { %1459 = vtanh.f32 %v310_v49 }
 0x2f3   :  { %1461 = vpow2.f32 %v1373_v53 }
 0x2f4   :  { %1463 = vpow2.f32 %v1383_v54 }
 0x2f6   :  { %v230_v50 = vpop.f32.mrf.mxu2 }
 0x2f7   :  { %v1458_v51 = vpop.eup %1457 }
 0x2f8   :  { %256 = vrot.lane.b32.xlu2 %v1458_v51, %s1579_s13  ;;  %v1460_v52 = vpop.eup %1459 }
 0x2f9   :  { %v1462_v55 = vpop.eup %1461 }
 0x2fa   :  { %v237_v56 = vadd.f32 1.0, %v1462_v55  ;;  %v1464_v57 = vpop.eup %1463 }
 0x2fb   :  { %v314_v58 = vadd.f32 1.0, %v1464_v57 }
 0x2fc   :  { %1465 = vrcp.f32 %v237_v56  ;;  %v249_v4 = vand.u32 2147483648, %v237_v56  ;;  %vm243_vm6 = vweird.f32 %v237_v56  ;;  %v247_v5 = vand.u32 2147483647, %v237_v56 }
 0x2fd   :  { %1467 = vrcp.f32 %v314_v58  ;;  %v326_v13 = vand.u32 2147483648, %v314_v58  ;;  %vm320_vm10 = vweird.f32 %v314_v58  ;;  %v324_v14 = vand.u32 2147483647, %v314_v58 }
 0x2fe   :  { %v250_v8 = vor.u32 1.1754944e-38, %v249_v4  ;;  %vm248_vm8 = vcmp.eq.f32.partialorder %v247_v5, 8.507059e+37 }
 0x2ff   :  { %v327_v16 = vor.u32 1.1754944e-38, %v326_v13  ;;  %vm325_vm12 = vcmp.eq.f32.partialorder %v324_v14, 8.507059e+37 }
 0x300   :  { %333 = vrot.lane.b32.xlu2 %v1460_v52, %s1579_s13 }
 0x302   :  { %v1466_v59 = vpop.eup %1465 }
 0x303   :  { %v239_v60 = vmul.f32 %v1466_v59, %v237_v56  ;;  %v1468_v62 = vpop.eup %1467  ;;  %vm244_vm5 = vweird.f32 %v1466_v59 }
 0x304   :  { %v316_v0 = vmul.f32 %v1468_v62, %v314_v58  ;;  %vm245_vm7 = vmor %vm243_vm6, %vm244_vm5  ;;  %vm321_vm9 = vweird.f32 %v1468_v62 }
 0x305   :  { %v240_v61 = vsub.f32 1.0, %v239_v60  ;;  %vm322_vm11 = vmor %vm320_vm10, %vm321_vm9 }
 0x306   :  { %v317_v2 = vsub.f32 1.0, %v316_v0 }
 0x307   :  { %v241_v63 = vmul.f32 %v1466_v59, %v240_v61 }
 0x308   :  { %v318_v7 = vmul.f32 %v1468_v62, %v317_v2 }
 0x309   :  { %v242_v1 = vadd.f32 %v1466_v59, %v241_v63 }
 0x30a   :  { %v319_v12 = vadd.f32 %v1468_v62, %v318_v7 }
 0x30b   :  { %v246_v6 = vsel %vm245_vm7, %v1466_v59, %v242_v1 }
 0x30c   :  { %v251_v10 = vsel %vm248_vm8, %v250_v8, %v246_v6  ;;  %v323_v15 = vsel %vm322_vm11, %v1468_v62, %v319_v12 }
 0x30d   :  { %v328_v18 = vsel %vm325_vm12, %v327_v16, %v323_v15  ;;  %v254_v20 = vmul.f32 0.0, %v251_v10 }
 0x30e   :  { %v331_v23 = vmul.f32 %v328_v18, %v1644_v24  ;;  %v1727_v24 = vld [vmem:[%s2005_s4 + $0x8] sm:$0xff] }
 0x30f   :  { %301 = vmatpush.bf16.msra.mxu3 %v1727_v24 }
 0x313   :  { %302 = vmatpush.bf16.msra.mxu3 %v1736_v35 }
 0x317   :  { %439 = vmatpush.bf16.msrb.mxu3 %v1727_v24 }
 0x31b   :  { %440 = vmatpush.bf16.msrb.mxu3 %v1736_v35 }
 0x352   :  { %v257_v9 = vpop.permute.xlu2 %256 }
 0x353   :  { %v259_v11 = vmul.f32 %v257_v9, %v251_v10 }
 0x355   :  { %261 = vrot.lane.b32.xlu0 %v259_v11, %s1580_s1 }
 0x35a   :  { %v334_v17 = vpop.permute.xlu2 %333 }
 0x35b   :  { %v336_v19 = vmul.f32 %v334_v17, %v328_v18 }
 0x35d   :  { %338 = vrot.lane.b32.xlu1 %v336_v19, %s1580_s1 }
 0x3c7   :  { %v262_v21 = vpop.permute.xlu0 %261 }
 0x3c8   :  { %v1710_v22 = vadd.f32 %v262_v21, %v254_v20 }
 0x3ca   :  { %1469 = vtanh.f32 %v1710_v22 }
 0x3cf   :  { %v339_v25 = vpop.permute.xlu1 %338 }
 0x3d0   :  { %v1470_v26 = vpop.eup %1469  ;;  %v1714_v27 = vadd.f32 %v339_v25, %v331_v23 }
 0x3d1   :  { %267 = vrot.lane.b32.xlu2 %v1470_v26, %s1579_s13 }
 0x3d2   :  { %1471 = vtanh.f32 %v1714_v27 }
 0x3d8   :  { %v1472_v28 = vpop.eup %1471 }
 0x3d9   :  { %344 = vrot.lane.b32.xlu0 %v1472_v28, %s1579_s13 }
 0x42b   :  { %v268_v30 = vpop.permute.xlu2 %267 }
 0x42c   :  { %v1719_v31 = vmul.f32 %v268_v30, %v251_v10 }
 0x42e   :  { %v276_v32 = vpack.c.bf16 %v1719_v31, %v1719_v31 }
 0x430   :  { %278 = vrot.lane.b32.xlu1 %v276_v32, %s1580_s1 }
 0x44b   :  { %v345_v38 = vpop.permute.xlu0 %344 }
 0x44c   :  { %v347_v39 = vmul.f32 %v345_v38, %v328_v18 }
 0x44e   :  { %v348_v40 = vpack.c.bf16 %v347_v39, %v347_v39 }
 0x450   :  { %350 = vrot.lane.b32.xlu2 %v348_v40, %s1580_s1 }
 0x4a2   :  { %v279_v41 = vpop.permute.xlu1 %278 }
 0x4a3   :  { %1382 = vmatmul.msk.bf16.vlgmr.msra.gmra.mxu3 %vm78_vm0, %v279_v41 }
 0x4a4   :  { %577 = vmatpush.bf16.msra.mxu3 %v1727_v24 }
 0x4a8   :  { %578 = vmatpush.bf16.msra.mxu3 %v1736_v35 }
 0x4aa   :  { %v351_v42 = vpop.permute.xlu2 %350 }
 0x4ab   :  { %1384 = vmatmul.msk.bf16.vlgmr.msrb.gmra.mxu1 %vm78_vm0, %v351_v42  ;;  %1385 = vmatmul.msk.bf16.vlgmr.msrb.gmra.mxu2 %vm78_vm0, %v351_v42 }
 0x4ac   :  { %650 = vmatpush.bf16.msrb.mxu2 %v1668_v33  ;;  %637 = vmatpush.bf16.msrb.mxu1 %v1657_v29 }
 0x4b0   :  { %651 = vmatpush.bf16.msrb.mxu2 %v1681_v37  ;;  %638 = vmatpush.bf16.msrb.mxu1 %v1677_v36 }
 0x526   :  { %v304_v46 = vpop.f32.mrf.mxu3 }
 0x528   :  { %v364_v47 = vpop.f32.mrf.mxu1 }
 0x529   :  { %v448_v48 = vadd.f32 %v364_v47, %v106_v45 }
 0x52b   :  { %1473 = vtanh.f32 %v448_v48  ;;  %v1388_v57 = vmul.f32 -1.442695, %v448_v48  ;;  %v107_v48 = vpop.f32.mrf.mxu0 }
 0x52e   :  { %v306_v49 = vpop.f32.mrf.mxu3  ;;  %v377_v50 = vpop.f32.mrf.mxu2 }
 0x52f   :  { %v381_v51 = vadd.f32 %v377_v50, %v304_v46  ;;  %v108_v49 = vadd.f32 %v1639_v3, %v107_v48 }
 0x530   :  { %v366_v52 = vpop.f32.mrf.mxu1 }
 0x531   :  { %v1474_v53 = vpop.eup %1473  ;;  %v382_v54 = vadd.f32 %v1702_v43, %v381_v51 }
 0x532   :  { %471 = vrot.lane.b32.xlu1 %v1474_v53, %s1579_s13 }
 0x533   :  { %1475 = vtanh.f32 %v382_v54  ;;  %v1386_v58 = vmul.f32 -1.442695, %v382_v54 }
 0x534   :  { %1477 = vpow2.f32 %v1388_v57 }
 0x535   :  { %1479 = vpow2.f32 %v1386_v58 }
 0x536   :  { %v379_v55 = vpop.f32.mrf.mxu2 }
 0x539   :  { %v1476_v56 = vpop.eup %1475 }
 0x53a   :  { %405 = vrot.lane.b32.xlu0 %v1476_v56, %s1579_s13  ;;  %v1478_v59 = vpop.eup %1477 }
 0x53b   :  { %v452_v60 = vadd.f32 1.0, %v1478_v59  ;;  %v1480_v61 = vpop.eup %1479 }
 0x53c   :  { %v386_v62 = vadd.f32 1.0, %v1480_v61 }
 0x53d   :  { %1481 = vrcp.f32 %v452_v60  ;;  %v464_v8 = vand.u32 2147483648, %v452_v60  ;;  %vm458_vm14 = vweird.f32 %v452_v60  ;;  %v462_v9 = vand.u32 2147483647, %v452_v60 }
 0x53e   :  { %1483 = vrcp.f32 %v386_v62  ;;  %v398_v17 = vand.u32 2147483648, %v386_v62  ;;  %vm392_vm3 = vweird.f32 %v386_v62  ;;  %v396_v18 = vand.u32 2147483647, %v386_v62 }
 0x53f   :  { %v465_v12 = vor.u32 1.1754944e-38, %v464_v8  ;;  %vm463_vm1 = vcmp.eq.f32.partialorder %v462_v9, 8.507059e+37 }
 0x540   :  { %v399_v20 = vor.u32 1.1754944e-38, %v398_v17  ;;  %vm397_vm5 = vcmp.eq.f32.partialorder %v396_v18, 8.507059e+37 }
 0x543   :  { %v1482_v63 = vpop.eup %1481 }
 0x544   :  { %v454_v0 = vmul.f32 %v1482_v63, %v452_v60  ;;  %v1484_v2 = vpop.eup %1483  ;;  %vm459_vm13 = vweird.f32 %v1482_v63 }
 0x545   :  { %v388_v5 = vmul.f32 %v1484_v2, %v386_v62  ;;  %vm460_vm15 = vmor %vm458_vm14, %vm459_vm13  ;;  %vm393_vm2 = vweird.f32 %v1484_v2 }
 0x546   :  { %v455_v1 = vsub.f32 1.0, %v454_v0  ;;  %vm394_vm4 = vmor %vm392_vm3, %vm393_vm2 }
 0x547   :  { %v389_v7 = vsub.f32 1.0, %v388_v5 }
 0x548   :  { %v456_v4 = vmul.f32 %v1482_v63, %v455_v1 }
 0x549   :  { %v390_v11 = vmul.f32 %v1484_v2, %v389_v7 }
 0x54a   :  { %v457_v6 = vadd.f32 %v1482_v63, %v456_v4 }
 0x54b   :  { %v391_v16 = vadd.f32 %v1484_v2, %v390_v11 }
 0x54c   :  { %v461_v10 = vsel %vm460_vm15, %v1482_v63, %v457_v6 }
 0x54d   :  { %v466_v14 = vsel %vm463_vm1, %v465_v12, %v461_v10  ;;  %v395_v19 = vsel %vm394_vm4, %v1484_v2, %v391_v16 }
 0x54e   :  { %v400_v23 = vsel %vm397_vm5, %v399_v20, %v395_v19  ;;  %v469_v34 = vmul.f32 %v466_v14, %v1714_v27 }
 0x54f   :  { %v403_v26 = vmul.f32 %v400_v23, %v1710_v22 }
 0x5a4   :  { %v472_v13 = vpop.permute.xlu1 %471 }
 0x5a5   :  { %v474_v15 = vmul.f32 %v472_v13, %v466_v14 }
 0x5a7   :  { %476 = vrot.lane.b32.xlu0 %v474_v15, %s1580_s1 }
 0x5ac   :  { %v406_v21 = vpop.permute.xlu0 %405 }
 0x5ad   :  { %v408_v25 = vmul.f32 %v406_v21, %v400_v23 }
 0x5af   :  { %410 = vrot.lane.b32.xlu2 %v408_v25, %s1580_s1 }
 0x609   :  { %v411_v28 = vpop.permute.xlu2 %410 }
 0x60a   :  { %v1759_v30 = vadd.f32 %v411_v28, %v403_v26 }
 0x60c   :  { %1485 = vtanh.f32 %v1759_v30 }
 0x612   :  { %v1486_v32 = vpop.eup %1485 }
 0x613   :  { %416 = vrot.lane.b32.xlu1 %v1486_v32, %s1579_s13 }
 0x619   :  { %v477_v38 = vpop.permute.xlu0 %476 }
 0x61a   :  { %v1764_v39 = vadd.f32 %v477_v38, %v469_v34 }
 0x61c   :  { %1487 = vtanh.f32 %v1764_v39 }
 0x622   :  { %v1488_v40 = vpop.eup %1487 }
 0x623   :  { %482 = vrot.lane.b32.xlu2 %v1488_v40, %s1579_s13 }
 0x67d   :  { %v483_v41 = vpop.permute.xlu2 %482 }
 0x67e   :  { %v485_v22 = vmul.f32 %v483_v41, %v466_v14 }
 0x680   :  { %v486_v42 = vpack.c.bf16 %v485_v22, %v485_v22 }
 0x682   :  { %488 = vrot.lane.b32.xlu1 %v486_v42, %s1580_s1 }
 0x685   :  { %v417_v44 = vpop.permute.xlu1 %416 }
 0x686   :  { %v1769_v45 = vmul.f32 %v417_v44, %v400_v23 }
 0x688   :  { %v426_v46 = vpack.c.bf16 %v1769_v45, %v1769_v45 }
 0x68a   :  { %428 = vrot.lane.b32.xlu0 %v426_v46, %s1580_s1 }
 0x6f4   :  { %v489_v27 = vpop.permute.xlu1 %488 }
 0x6f5   :  { %1389 = vmatmul.msk.bf16.vlgmr.msra.gmra.mxu1 %vm78_vm0, %v489_v27  ;;  %1390 = vmatmul.msk.bf16.vlgmr.msra.gmra.mxu2 %vm78_vm0, %v489_v27 }
 0x6f6   :  { %788 = vmatpush.bf16.msra.mxu1 %v1668_v33  ;;  %853 = vmatpush.bf16.msra.mxu2 %v1727_v24 }
 0x6fa   :  { %789 = vmatpush.bf16.msra.mxu1 %v1681_v37  ;;  %854 = vmatpush.bf16.msra.mxu2 %v1736_v35 }
 0x6fc   :  { %v429_v47 = vpop.permute.xlu0 %428 }
 0x6fd   :  { %1387 = vmatmul.msk.bf16.vlgmr.msrb.gmra.mxu3 %vm78_vm0, %v429_v47 }
 0x6fe   :  { %715 = vmatpush.bf16.msrb.mxu3 %v1727_v24 }
 0x702   :  { %716 = vmatpush.bf16.msrb.mxu3 %v1736_v35 }
 0x772   :  { %v502_v50 = vpop.f32.mrf.mxu1 }
 0x773   :  { %v586_v51 = vadd.f32 %v502_v50, %v108_v49 }
 0x775   :  { %1489 = vtanh.f32 %v586_v51  ;;  %v1393_v62 = vmul.f32 -1.442695, %v586_v51 }
 0x778   :  { %v515_v52 = vpop.f32.mrf.mxu2 }
 0x77a   :  { %v504_v53 = vpop.f32.mrf.mxu1 }
 0x77b   :  { %v1490_v54 = vpop.eup %1489 }
 0x77c   :  { %609 = vrot.lane.b32.xlu0 %v1490_v54, %s1579_s13 }
 0x780   :  { %v442_v55 = vpop.f32.mrf.mxu3  ;;  %v517_v56 = vpop.f32.mrf.mxu2 }
 0x781   :  { %v519_v57 = vadd.f32 %v515_v52, %v442_v55 }
 0x783   :  { %v520_v58 = vadd.f32 %v1702_v43, %v519_v57 }
 0x785   :  { %1491 = vtanh.f32 %v520_v58  ;;  %v1391_v61 = vmul.f32 -1.442695, %v520_v58 }
 0x787   :  { %1493 = vpow2.f32 %v1391_v61 }
 0x788   :  { %v444_v59 = vpop.f32.mrf.mxu3  ;;  %1495 = vpow2.f32 %v1393_v62 }
 0x78b   :  { %v1492_v60 = vpop.eup %1491 }
 0x78c   :  { %543 = vrot.lane.b32.xlu2 %v1492_v60, %s1579_s13 }
 0x78d   :  { %v1494_v63 = vpop.eup %1493 }
 0x78e   :  { %v524_v0 = vadd.f32 1.0, %v1494_v63  ;;  %v1496_v1 = vpop.eup %1495 }
 0x78f   :  { %v590_v2 = vadd.f32 1.0, %v1496_v1 }
 0x790   :  { %1497 = vrcp.f32 %v524_v0  ;;  %v536_v12 = vand.u32 2147483648, %v524_v0  ;;  %vm530_vm7 = vweird.f32 %v524_v0  ;;  %v534_v13 = vand.u32 2147483647, %v524_v0 }
 0x791   :  { %1499 = vrcp.f32 %v590_v2  ;;  %v602_v21 = vand.u32 2147483648, %v590_v2  ;;  %vm596_vm11 = vweird.f32 %v590_v2  ;;  %v600_v23 = vand.u32 2147483647, %v590_v2 }
 0x792   :  { %v537_v16 = vor.u32 1.1754944e-38, %v536_v12  ;;  %vm535_vm9 = vcmp.eq.f32.partialorder %v534_v13, 8.507059e+37 }
 0x793   :  { %v603_v26 = vor.u32 1.1754944e-38, %v602_v21  ;;  %vm601_vm13 = vcmp.eq.f32.partialorder %v600_v23, 8.507059e+37 }
 0x796   :  { %v1498_v4 = vpop.eup %1497 }
 0x797   :  { %v526_v5 = vmul.f32 %v1498_v4, %v524_v0  ;;  %v1500_v7 = vpop.eup %1499  ;;  %vm531_vm6 = vweird.f32 %v1498_v4 }
 0x798   :  { %v592_v9 = vmul.f32 %v1500_v7, %v590_v2  ;;  %vm532_vm8 = vmor %vm530_vm7, %vm531_vm6  ;;  %vm597_vm10 = vweird.f32 %v1500_v7 }
 0x799   :  { %v527_v6 = vsub.f32 1.0, %v526_v5  ;;  %vm598_vm12 = vmor %vm596_vm11, %vm597_vm10 }
 0x79a   :  { %v593_v11 = vsub.f32 1.0, %v592_v9 }
 0x79b   :  { %v528_v8 = vmul.f32 %v1498_v4, %v527_v6 }
 0x79c   :  { %v594_v15 = vmul.f32 %v1500_v7, %v593_v11 }
 0x79d   :  { %v529_v10 = vadd.f32 %v1498_v4, %v528_v8 }
 0x79e   :  { %v595_v20 = vadd.f32 %v1500_v7, %v594_v15 }
 0x79f   :  { %v533_v14 = vsel %vm532_vm8, %v1498_v4, %v529_v10 }
 0x7a0   :  { %v538_v18 = vsel %vm535_vm9, %v537_v16, %v533_v14  ;;  %v599_v25 = vsel %vm598_vm12, %v1500_v7, %v595_v20 }
 0x7a1   :  { %v604_v32 = vsel %vm601_vm13, %v603_v26, %v599_v25  ;;  %v541_v42 = vmul.f32 %v538_v18, %v1759_v30  ;;  %v1430_v30 = vld [vmem:[%s2002_s0 + $0x10] sm:$0xff] }
 0x7a2   :  { %v607_v38 = vmul.f32 %v604_v32, %v1764_v39  ;;  %1352 = vmatmul.msk.bf16.gmra.mxu0 %vm78_vm0, %v1430_v30 }
 0x7e6   :  { %v544_v17 = vpop.permute.xlu2 %543 }
 0x7e7   :  { %v546_v19 = vmul.f32 %v544_v17, %v538_v18 }
 0x7e9   :  { %548 = vrot.lane.b32.xlu1 %v546_v19, %s1580_s1 }
 0x7ee   :  { %v610_v28 = vpop.permute.xlu0 %609 }
 0x7ef   :  { %v612_v34 = vmul.f32 %v610_v28, %v604_v32 }
 0x7f1   :  { %614 = vrot.lane.b32.xlu2 %v612_v34, %s1580_s1 }
 0x81f   :  { %v110_v54 = vpop.f32.mrf.mxu0 }
 0x820   :  { %v111_v55 = vadd.f32 %v1639_v3, %v110_v54 }
 0x84b   :  { %v615_v40 = vpop.permute.xlu2 %614 }
 0x84c   :  { %v1790_v41 = vadd.f32 %v615_v40, %v607_v38 }
 0x84e   :  { %1501 = vtanh.f32 %v1790_v41 }
 0x854   :  { %v1502_v22 = vpop.eup %1501 }
 0x855   :  { %620 = vrot.lane.b32.xlu1 %v1502_v22, %s1579_s13 }
 0x85b   :  { %v549_v44 = vpop.permute.xlu1 %548 }
 0x85c   :  { %v1795_v46 = vadd.f32 %v549_v44, %v541_v42 }
 0x85e   :  { %1503 = vtanh.f32 %v1795_v46 }
 0x864   :  { %v1504_v27 = vpop.eup %1503 }
 0x865   :  { %554 = vrot.lane.b32.xlu0 %v1504_v27, %s1579_s13 }
 0x8c7   :  { %v621_v47 = vpop.permute.xlu1 %620 }
 0x8c8   :  { %v623_v39 = vmul.f32 %v621_v47, %v604_v32 }
 0x8ca   :  { %v624_v48 = vpack.c.bf16 %v623_v39, %v623_v39 }
 0x8cc   :  { %626 = vrot.lane.b32.xlu0 %v624_v48, %s1580_s1 }
 0x8d7   :  { %v555_v49 = vpop.permute.xlu0 %554 }
 0x8d8   :  { %v1800_v50 = vmul.f32 %v555_v49, %v538_v18 }
 0x8da   :  { %v564_v51 = vpack.c.bf16 %v1800_v50, %v1800_v50 }
 0x8dc   :  { %566 = vrot.lane.b32.xlu2 %v564_v51, %s1580_s1 }
 0x936   :  { %v567_v52 = vpop.permute.xlu2 %566 }
 0x937   :  { %1392 = vmatmul.msk.bf16.vlgmr.msra.gmra.mxu3 %vm78_vm0, %v567_v52 }
 0x938   :  { %913 = vmatpush.bf16.msra.mxu3 %v1657_v29 }
 0x93c   :  { %914 = vmatpush.bf16.msra.mxu3 %v1677_v36 }
 0x93e   :  { %v627_v53 = vpop.permute.xlu0 %626 }
 0x93f   :  { %1394 = vmatmul.msk.bf16.vlgmr.msrb.gmra.mxu1 %vm78_vm0, %v627_v53  ;;  %1395 = vmatmul.msk.bf16.vlgmr.msrb.gmra.mxu2 %vm78_vm0, %v627_v53 }
 0x940   :  { %1051 = vmatpush.bf16.msrb.mxu2 %v1657_v29  ;;  %991 = vmatpush.bf16.msrb.mxu1 %v1727_v24 }
 0x944   :  { %1052 = vmatpush.bf16.msrb.mxu2 %v1677_v36  ;;  %992 = vmatpush.bf16.msrb.mxu1 %v1736_v35 }
 0x9ba   :  { %v580_v56 = vpop.f32.mrf.mxu3 }
 0x9bc   :  { %v640_v57 = vpop.f32.mrf.mxu1 }
 0x9bd   :  { %v724_v58 = vadd.f32 %v640_v57, %v111_v55 }
 0x9bf   :  { %1505 = vtanh.f32 %v724_v58  ;;  %v1398_v1 = vmul.f32 -1.442695, %v724_v58 }
 0x9c2   :  { %v582_v59 = vpop.f32.mrf.mxu3  ;;  %v653_v60 = vpop.f32.mrf.mxu2 }
 0x9c3   :  { %v657_v61 = vadd.f32 %v653_v60, %v580_v56  ;;  %v112_v59 = vpop.f32.mrf.mxu0 }
 0x9c4   :  { %v642_v62 = vpop.f32.mrf.mxu1 }
 0x9c5   :  { %v1506_v63 = vpop.eup %1505  ;;  %v658_v29 = vadd.f32 %v1702_v43, %v657_v61  ;;  %v113_v62 = vadd.f32 %v1639_v3, %v112_v59 }
 0x9c6   :  { %747 = vrot.lane.b32.xlu2 %v1506_v63, %s1579_s13 }
 0x9c7   :  { %1507 = vtanh.f32 %v658_v29  ;;  %v1396_v8 = vmul.f32 -1.442695, %v658_v29 }
 0x9c8   :  { %1509 = vpow2.f32 %v1398_v1 }
 0x9ca   :  { %v655_v36 = vpop.f32.mrf.mxu2 }
 0x9cd   :  { %v1508_v0 = vpop.eup %1507 }
 0x9ce   :  { %681 = vrot.lane.b32.xlu1 %v1508_v0, %s1579_s13  ;;  %v1510_v2 = vpop.eup %1509 }
 0x9cf   :  { %v728_v4 = vadd.f32 1.0, %v1510_v2 }
 0x9d1   :  { %1511 = vrcp.f32 %v728_v4  ;;  %v740_v11 = vand.u32 2147483648, %v728_v4  ;;  %vm734_vm15 = vweird.f32 %v728_v4  ;;  %v738_v12 = vand.u32 2147483647, %v728_v4 }
 0x9d2   :  { %1513 = vpow2.f32 %v1396_v8 }
 0x9d3   :  { %v741_v15 = vor.u32 1.1754944e-38, %v740_v11  ;;  %vm739_vm2 = vcmp.eq.f32.partialorder %v738_v12, 8.507059e+37 }
 0x9d7   :  { %v1512_v5 = vpop.eup %1511 }
 0x9d8   :  { %v730_v6 = vmul.f32 %v1512_v5, %v728_v4  ;;  %vm735_vm14 = vweird.f32 %v1512_v5  ;;  %v1514_v13 = vpop.eup %1513 }
 0x9d9   :  { %vm736_vm1 = vmor %vm734_vm15, %vm735_vm14  ;;  %v662_v16 = vadd.f32 1.0, %v1514_v13 }
 0x9da   :  { %v731_v7 = vsub.f32 1.0, %v730_v6 }
 0x9db   :  { %1515 = vrcp.f32 %v662_v16  ;;  %v674_v28 = vand.u32 2147483648, %v662_v16  ;;  %vm668_vm4 = vweird.f32 %v662_v16  ;;  %v672_v32 = vand.u32 2147483647, %v662_v16 }
 0x9dc   :  { %v732_v9 = vmul.f32 %v1512_v5, %v731_v7 }
 0x9dd   :  { %v675_v38 = vor.u32 1.1754944e-38, %v674_v28  ;;  %vm673_vm6 = vcmp.eq.f32.partialorder %v672_v32, 8.507059e+37 }
 0x9de   :  { %v733_v10 = vadd.f32 %v1512_v5, %v732_v9 }
 0x9e0   :  { %v737_v14 = vsel %vm736_vm1, %v1512_v5, %v733_v10 }
 0x9e1   :  { %v742_v18 = vsel %vm739_vm2, %v741_v15, %v737_v14  ;;  %v1516_v20 = vpop.eup %1515 }
 0x9e2   :  { %v664_v21 = vmul.f32 %v1516_v20, %v662_v16  ;;  %vm669_vm3 = vweird.f32 %v1516_v20  ;;  %v745_v44 = vmul.f32 %v742_v18, %v1790_v41  ;;  %v1431_v41 = vld [vmem:[%s2002_s0 + $0x18] sm:$0xff] }
 0x9e3   :  { %vm670_vm5 = vmor %vm668_vm4, %vm669_vm3  ;;  %1353 = vmatmul.msk.bf16.gmra.mxu0 %vm78_vm0, %v1431_v41 }
 0x9e4   :  { %v665_v23 = vsub.f32 1.0, %v664_v21 }
 0x9e6   :  { %v666_v25 = vmul.f32 %v1516_v20, %v665_v23 }
 0x9e8   :  { %v667_v26 = vadd.f32 %v1516_v20, %v666_v25 }
 0x9ea   :  { %v671_v34 = vsel %vm670_vm5, %v1516_v20, %v667_v26 }
 0x9eb   :  { %v676_v22 = vsel %vm673_vm6, %v675_v38, %v671_v34 }
 0x9ec   :  { %v679_v48 = vmul.f32 %v676_v22, %v1795_v46 }
 0xa20   :  { %v748_v17 = vpop.permute.xlu2 %747 }
 0xa21   :  { %v750_v19 = vmul.f32 %v748_v17, %v742_v18 }
 0xa23   :  { %752 = vrot.lane.b32.xlu1 %v750_v19, %s1580_s1 }
 0xa40   :  { %v682_v40 = vpop.permute.xlu1 %681 }
 0xa41   :  { %v684_v42 = vmul.f32 %v682_v40, %v676_v22 }
 0xa43   :  { %686 = vrot.lane.b32.xlu0 %v684_v42, %s1580_s1 }
 0xa60   :  { %v1853_v60 = vpop.f32.mrf.mxu0 }
 0xa68   :  { %v1855_v61 = vpop.f32.mrf.mxu0 }
 0xa95   :  { %v753_v27 = vpop.permute.xlu1 %752 }
 0xa96   :  { %v1825_v47 = vadd.f32 %v753_v27, %v745_v44 }
 0xa98   :  { %1517 = vtanh.f32 %v1825_v47 }
 0xa9e   :  { %v1518_v39 = vpop.eup %1517 }
 0xa9f   :  { %758 = vrot.lane.b32.xlu0 %v1518_v39, %s1579_s13 }
 0xab5   :  { %v687_v49 = vpop.permute.xlu0 %686 }
 0xab6   :  { %v1830_v51 = vadd.f32 %v687_v49, %v679_v48 }
 0xab8   :  { %1519 = vtanh.f32 %v1830_v51 }
 0xabe   :  { %v1520_v30 = vpop.eup %1519 }
 0xabf   :  { %692 = vrot.lane.b32.xlu2 %v1520_v30, %s1579_s13 }
 0xb11   :  { %v759_v52 = vpop.permute.xlu0 %758 }
 0xb12   :  { %v761_v53 = vmul.f32 %v759_v52, %v742_v18 }
 0xb14   :  { %v762_v54 = vpack.c.bf16 %v761_v53, %v761_v53 }
 0xb16   :  { %764 = vrot.lane.b32.xlu2 %v762_v54, %s1580_s1 }
 0xb19   :  { %v693_v46 = vpop.permute.xlu2 %692 }
 0xb1a   :  { %v1839_v55 = vmul.f32 %v693_v46, %v676_v22 }
 0xb1c   :  { %v702_v56 = vpack.c.bf16 %v1839_v55, %v1839_v55 }
 0xb1e   :  { %704 = vrot.lane.b32.xlu1 %v702_v56, %s1580_s1 }
 0xb70   :  { %v765_v57 = vpop.permute.xlu2 %764 }
 0xb71   :  { %1399 = vmatmul.msk.bf16.vlgmr.msrb.gmra.mxu0 %vm78_vm0, %v765_v57  ;;  %1400 = vmatmul.msk.bf16.vlgmr.msra.gmra.mxu1 %vm78_vm0, %v765_v57 }
 0xb72   :  { %1189 = vmatpush.bf16.msra.mxu1 %v1668_v33  ;;  %1129 = vmatpush.bf16.msrb.mxu0 %v1727_v24 }
 0xb76   :  { %1190 = vmatpush.bf16.msra.mxu1 %v1681_v37  ;;  %1130 = vmatpush.bf16.msrb.mxu0 %v1736_v35 }
 0xb90   :  { %v705_v58 = vpop.permute.xlu1 %704 }
 0xb91   :  { %1397 = vmatmul.msk.bf16.vlgmr.msrb.gmra.mxu3 %vm78_vm0, %v705_v58 }
 0xb92   :  { %1064 = vmatpush.bf16.msrb.mxu3 %v1668_v33 }
 0xb96   :  { %1065 = vmatpush.bf16.msrb.mxu3 %v1681_v37 }
 0xbee   :  { %v778_v63 = vpop.f32.mrf.mxu0  ;;  %v791_v24 = vpop.f32.mrf.mxu1 }
 0xbef   :  { %v862_v29 = vadd.f32 %v778_v63, %v113_v62 }
 0xbf1   :  { %1521 = vtanh.f32 %v862_v29  ;;  %v1403_v5 = vmul.f32 -1.442695, %v862_v29 }
 0xbf6   :  { %v780_v36 = vpop.f32.mrf.mxu0  ;;  %v793_v35 = vpop.f32.mrf.mxu1 }
 0xbf7   :  { %v1522_v0 = vpop.eup %1521 }
 0xbf8   :  { %885 = vrot.lane.b32.xlu0 %v1522_v0, %s1579_s13 }
 0xc14   :  { %v718_v1 = vpop.f32.mrf.mxu3 }
 0xc15   :  { %v795_v33 = vadd.f32 %v791_v24, %v718_v1  ;;  %v1885_v24 = vld [vmem:[%s2001_s2] ss:$0 sm:$0xff] }
 0xc16   :  { %v116_v29 = vadd.f32 %v1885_v24, %v1853_v60 }
 0xc17   :  { %v796_v37 = vadd.f32 %v1702_v43, %v795_v33 }
 0xc19   :  { %1523 = vtanh.f32 %v796_v37  ;;  %v1401_v13 = vmul.f32 -1.442695, %v796_v37 }
 0xc1a   :  { %1525 = vpow2.f32 %v1403_v5 }
 0xc1c   :  { %v720_v2 = vpop.f32.mrf.mxu3 }
 0xc1f   :  { %v1524_v4 = vpop.eup %1523 }
 0xc20   :  { %819 = vrot.lane.b32.xlu1 %v1524_v4, %s1579_s13  ;;  %v1526_v3 = vpop.eup %1525 }
 0xc21   :  { %v866_v6 = vadd.f32 1.0, %v1526_v3 }
 0xc23   :  { %1527 = vrcp.f32 %v866_v6  ;;  %v878_v12 = vand.u32 2147483648, %v866_v6  ;;  %vm872_vm8 = vweird.f32 %v866_v6  ;;  %v876_v14 = vand.u32 2147483647, %v866_v6 }
 0xc24   :  { %1529 = vpow2.f32 %v1401_v13 }
 0xc25   :  { %v879_v16 = vor.u32 1.1754944e-38, %v878_v12  ;;  %vm877_vm10 = vcmp.eq.f32.partialorder %v876_v14, 8.507059e+37 }
 0xc29   :  { %v1528_v7 = vpop.eup %1527 }
 0xc2a   :  { %v868_v8 = vmul.f32 %v1528_v7, %v866_v6  ;;  %vm873_vm7 = vweird.f32 %v1528_v7  ;;  %v1530_v20 = vpop.eup %1529 }
 0xc2b   :  { %vm874_vm9 = vmor %vm872_vm8, %vm873_vm7  ;;  %v800_v21 = vadd.f32 1.0, %v1530_v20 }
 0xc2c   :  { %v869_v9 = vsub.f32 1.0, %v868_v8 }
 0xc2d   :  { %1531 = vrcp.f32 %v800_v21  ;;  %v812_v34 = vand.u32 2147483648, %v800_v21  ;;  %vm806_vm12 = vweird.f32 %v800_v21  ;;  %v810_v38 = vand.u32 2147483647, %v800_v21 }
 0xc2e   :  { %v870_v10 = vmul.f32 %v1528_v7, %v869_v9 }
 0xc2f   :  { %v813_v22 = vor.u32 1.1754944e-38, %v812_v34  ;;  %vm811_vm14 = vcmp.eq.f32.partialorder %v810_v38, 8.507059e+37 }
 0xc30   :  { %v871_v11 = vadd.f32 %v1528_v7, %v870_v10 }
 0xc32   :  { %v875_v15 = vsel %vm874_vm9, %v1528_v7, %v871_v11 }
 0xc33   :  { %v880_v18 = vsel %vm877_vm10, %v879_v16, %v875_v15  ;;  %v1532_v23 = vpop.eup %1531 }
 0xc34   :  { %v802_v25 = vmul.f32 %v1532_v23, %v800_v21  ;;  %vm807_vm11 = vweird.f32 %v1532_v23  ;;  %v883_v39 = vmul.f32 %v880_v18, %v1825_v47 }
 0xc35   :  { %vm808_vm13 = vmor %vm806_vm12, %vm807_vm11 }
 0xc36   :  { %v803_v26 = vsub.f32 1.0, %v802_v25 }
 0xc38   :  { %v804_v28 = vmul.f32 %v1532_v23, %v803_v26 }
 0xc3a   :  { %v805_v32 = vadd.f32 %v1532_v23, %v804_v28 }
 0xc3c   :  { %v809_v40 = vsel %vm808_vm13, %v1532_v23, %v805_v32 }
 0xc3d   :  { %v814_v44 = vsel %vm811_vm14, %v813_v22, %v809_v40 }
 0xc3e   :  { %v817_v41 = vmul.f32 %v814_v44, %v1830_v51 }
 0xc6a   :  { %v886_v17 = vpop.permute.xlu0 %885 }
 0xc6b   :  { %v888_v19 = vmul.f32 %v886_v17, %v880_v18 }
 0xc6d   :  { %890 = vrot.lane.b32.xlu2 %v888_v19, %s1580_s1 }
 0xc92   :  { %v820_v42 = vpop.permute.xlu1 %819 }
 0xc93   :  { %v822_v27 = vmul.f32 %v820_v42, %v814_v44 }
 0xc95   :  { %824 = vrot.lane.b32.xlu0 %v822_v27, %s1580_s1 }
 0xcc7   :  { %v891_v48 = vpop.permute.xlu2 %890 }
 0xcc8   :  { %v1864_v49 = vadd.f32 %v891_v48, %v883_v39 }
 0xcca   :  { %1533 = vtanh.f32 %v1864_v49 }
 0xcd0   :  { %v1534_v30 = vpop.eup %1533 }
 0xcd1   :  { %896 = vrot.lane.b32.xlu1 %v1534_v30, %s1579_s13 }
 0xd07   :  { %v825_v52 = vpop.permute.xlu0 %824 }
 0xd08   :  { %v1869_v53 = vadd.f32 %v825_v52, %v817_v41 }
 0xd0a   :  { %1535 = vtanh.f32 %v1869_v53 }
 0xd10   :  { %v1536_v54 = vpop.eup %1535 }
 0xd11   :  { %830 = vrot.lane.b32.xlu2 %v1536_v54, %s1579_s13 }
 0xd43   :  { %v897_v46 = vpop.permute.xlu1 %896 }
 0xd44   :  { %v899_v47 = vmul.f32 %v897_v46, %v880_v18 }
 0xd46   :  { %v900_v56 = vpack.c.bf16 %v899_v47, %v899_v47 }
 0xd48   :  { %902 = vrot.lane.b32.xlu0 %v900_v56, %s1580_s1 }
 0xd6b   :  { %v831_v57 = vpop.permute.xlu2 %830 }
 0xd6c   :  { %v1874_v58 = vmul.f32 %v831_v57, %v814_v44 }
 0xd6e   :  { %v840_v59 = vpack.c.bf16 %v1874_v58, %v1874_v58 }
 0xd70   :  { %842 = vrot.lane.b32.xlu1 %v840_v59, %s1580_s1 }
 0xdba   :  { %v903_v51 = vpop.permute.xlu0 %902 }
 0xdbb   :  { %1404 = vmatmul.msk.bf16.vlgmr.msra.gmra.mxu3 %vm78_vm0, %v903_v51  ;;  %1405 = vmatmul.msk.bf16.vlgmr.msra.gmra.mxu0 %vm78_vm0, %v903_v51 }
 0xde2   :  { %v843_v62 = vpop.permute.xlu1 %842 }
 0xde3   :  { %1402 = vmatmul.msk.bf16.vlgmr.msra.gmra.mxu2 %vm78_vm0, %v843_v62 }
 0xe38   :  { %v929_v63 = vpop.f32.mrf.mxu0 }
 0xe3e   :  { %v916_v36 = vpop.f32.mrf.mxu3 }
 0xe3f   :  { %v1000_v35 = vadd.f32 %v916_v36, %v116_v29  ;;  %v118_v29 = vadd.f32 %v1885_v24, %v1855_v61 }
 0xe40   :  { %v931_v0 = vpop.f32.mrf.mxu0 }
 0xe41   :  { %1537 = vtanh.f32 %v1000_v35  ;;  %v1408_v6 = vmul.f32 -1.442695, %v1000_v35 }
 0xe46   :  { %v918_v1 = vpop.f32.mrf.mxu3 }
 0xe47   :  { %v1538_v33 = vpop.eup %1537 }
 0xe48   :  { %1023 = vrot.lane.b32.xlu2 %v1538_v33, %s1579_s13 }
 0xe66   :  { %v856_v37 = vpop.f32.mrf.mxu2 }
 0xe67   :  { %v933_v2 = vadd.f32 %v929_v63, %v856_v37 }
 0xe69   :  { %v934_v4 = vadd.f32 %v1702_v43, %v933_v2 }
 0xe6b   :  { %1539 = vtanh.f32 %v934_v4  ;;  %v1406_v19 = vmul.f32 -1.442695, %v934_v4 }
 0xe6c   :  { %1541 = vpow2.f32 %v1408_v6 }
 0xe6e   :  { %v858_v5 = vpop.f32.mrf.mxu2 }
 0xe71   :  { %v1540_v3 = vpop.eup %1539 }
 0xe72   :  { %957 = vrot.lane.b32.xlu0 %v1540_v3, %s1579_s13  ;;  %v1542_v60 = vpop.eup %1541  ;;  %v1919_v3 = vld [vmem:[%s2004_s5] ss:$0 sm:$0xff] }
 0xe73   :  { %v1004_v7 = vadd.f32 1.0, %v1542_v60 }
 0xe75   :  { %1543 = vrcp.f32 %v1004_v7  ;;  %v1016_v13 = vand.u32 2147483648, %v1004_v7  ;;  %vm1010_vm1 = vweird.f32 %v1004_v7  ;;  %v1014_v14 = vand.u32 2147483647, %v1004_v7 }
 0xe76   :  { %1545 = vpow2.f32 %v1406_v19 }
 0xe77   :  { %v1017_v15 = vor.u32 1.1754944e-38, %v1016_v13  ;;  %vm1015_vm3 = vcmp.eq.f32.partialorder %v1014_v14, 8.507059e+37 }
 0xe7b   :  { %v1544_v8 = vpop.eup %1543 }
 0xe7c   :  { %v1006_v9 = vmul.f32 %v1544_v8, %v1004_v7  ;;  %vm1011_vm15 = vweird.f32 %v1544_v8  ;;  %v1546_v20 = vpop.eup %1545 }
 0xe7d   :  { %vm1012_vm2 = vmor %vm1010_vm1, %vm1011_vm15  ;;  %v938_v21 = vadd.f32 1.0, %v1546_v20 }
 0xe7e   :  { %v1007_v10 = vsub.f32 1.0, %v1006_v9 }
 0xe7f   :  { %1547 = vrcp.f32 %v938_v21  ;;  %v950_v34 = vand.u32 2147483648, %v938_v21  ;;  %vm944_vm5 = vweird.f32 %v938_v21  ;;  %v948_v38 = vand.u32 2147483647, %v938_v21 }
 0xe80   :  { %v1008_v11 = vmul.f32 %v1544_v8, %v1007_v10 }
 0xe81   :  { %v951_v22 = vor.u32 1.1754944e-38, %v950_v34  ;;  %vm949_vm7 = vcmp.eq.f32.partialorder %v948_v38, 8.507059e+37 }
 0xe82   :  { %v1009_v12 = vadd.f32 %v1544_v8, %v1008_v11 }
 0xe84   :  { %v1013_v43 = vsel %vm1012_vm2, %v1544_v8, %v1009_v12 }
 0xe85   :  { %v1018_v16 = vsel %vm1015_vm3, %v1017_v15, %v1013_v43  ;;  %v1548_v23 = vpop.eup %1547 }
 0xe86   :  { %v940_v25 = vmul.f32 %v1548_v23, %v938_v21  ;;  %vm945_vm4 = vweird.f32 %v1548_v23  ;;  %v1021_v39 = vmul.f32 %v1018_v16, %v1864_v49 }
 0xe87   :  { %vm946_vm6 = vmor %vm944_vm5, %vm945_vm4 }
 0xe88   :  { %v941_v26 = vsub.f32 1.0, %v940_v25 }
 0xe8a   :  { %v942_v28 = vmul.f32 %v1548_v23, %v941_v26 }
 0xe8c   :  { %v943_v32 = vadd.f32 %v1548_v23, %v942_v28 }
 0xe8e   :  { %v947_v40 = vsel %vm946_vm6, %v1548_v23, %v943_v32 }
 0xe8f   :  { %v952_v44 = vsel %vm949_vm7, %v951_v22, %v947_v40 }
 0xe90   :  { %v955_v52 = vmul.f32 %v952_v44, %v1869_v53 }
 0xea2   :  { %v1024_v17 = vpop.permute.xlu2 %1023 }
 0xea3   :  { %v1026_v18 = vmul.f32 %v1024_v17, %v1018_v16 }
 0xea5   :  { %1028 = vrot.lane.b32.xlu1 %v1026_v18, %s1580_s1 }
 0xee4   :  { %v958_v42 = vpop.permute.xlu0 %957 }
 0xee5   :  { %v960_v27 = vmul.f32 %v958_v42, %v952_v44 }
 0xee7   :  { %962 = vrot.lane.b32.xlu2 %v960_v27, %s1580_s1 }
 0xf17   :  { %v1029_v48 = vpop.permute.xlu1 %1028 }
 0xf18   :  { %v1895_v30 = vadd.f32 %v1029_v48, %v1021_v39 }
 0xf1a   :  { %1549 = vtanh.f32 %v1895_v30 }
 0xf20   :  { %v1550_v41 = vpop.eup %1549 }
 0xf21   :  { %1034 = vrot.lane.b32.xlu0 %v1550_v41, %s1579_s13 }
 0xf41   :  { %v963_v54 = vpop.permute.xlu2 %962 }
 0xf42   :  { %v1900_v46 = vadd.f32 %v963_v54, %v955_v52 }
 0xf44   :  { %1551 = vtanh.f32 %v1900_v46 }
 0xf4a   :  { %v1552_v47 = vpop.eup %1551 }
 0xf4b   :  { %968 = vrot.lane.b32.xlu1 %v1552_v47, %s1579_s13 }
 0xf93   :  { %v1035_v56 = vpop.permute.xlu0 %1034 }
 0xf94   :  { %v1037_v49 = vmul.f32 %v1035_v56, %v1018_v16 }
 0xf96   :  { %v1038_v57 = vpack.c.bf16 %v1037_v49, %v1037_v49 }
 0xf98   :  { %1040 = vrot.lane.b32.xlu2 %v1038_v57, %s1580_s1 }
 0xfbd   :  { %v969_v59 = vpop.permute.xlu1 %968 }
 0xfbe   :  { %v1905_v51 = vmul.f32 %v969_v59, %v952_v44 }
 0xfc0   :  { %v978_v62 = vpack.c.bf16 %v1905_v51, %v1905_v51 }
 0xfc2   :  { %980 = vrot.lane.b32.xlu0 %v978_v62, %s1580_s1 }
 0xff2   :  { %v1041_v53 = vpop.permute.xlu2 %1040 }
 0xff3   :  { %1409 = vmatmul.msk.bf16.vlgmr.msrb.gmra.mxu2 %vm78_vm0, %v1041_v53  ;;  %1410 = vmatmul.msk.bf16.vlgmr.msrb.gmra.mxu3 %vm78_vm0, %v1041_v53 }
0x1034   :  { %v981_v63 = vpop.permute.xlu0 %980 }
0x1035   :  { %1407 = vmatmul.msk.bf16.vlgmr.msrb.gmra.mxu1 %vm78_vm0, %v981_v63 }
0x1076   :  { %v1054_v36 = vpop.f32.mrf.mxu2  ;;  %v1067_v35 = vpop.f32.mrf.mxu3 }
0x1077   :  { %v1138_v0 = vadd.f32 %v1054_v36, %v118_v29 }
0x1079   :  { %1553 = vtanh.f32 %v1138_v0  ;;  %v1413_v2 = vmul.f32 -1.442695, %v1138_v0 }
0x107b   :  { %1555 = vpow2.f32 %v1413_v2 }
0x107e   :  { %v1056_v1 = vpop.f32.mrf.mxu2  ;;  %v1069_v33 = vpop.f32.mrf.mxu3 }
0x107f   :  { %v1554_v37 = vpop.eup %1553 }
0x1080   :  { %1161 = vrot.lane.b32.xlu2 %v1554_v37, %s1579_s13 }
0x1081   :  { %v1556_v24 = vpop.eup %1555 }
0x1082   :  { %v1142_v6 = vadd.f32 1.0, %v1556_v24 }
0x1084   :  { %v1154_v13 = vand.u32 2147483648, %v1142_v6  ;;  %vm1148_vm9 = vweird.f32 %v1142_v6  ;;  %v1152_v14 = vand.u32 2147483647, %v1142_v6 }
0x1086   :  { %v1155_v15 = vor.u32 1.1754944e-38, %v1154_v13  ;;  %vm1153_vm11 = vcmp.eq.f32.partialorder %v1152_v14, 8.507059e+37 }
0x10b2   :  { %v994_v4 = vpop.f32.mrf.mxu1 }
0x10b3   :  { %v1071_v5 = vadd.f32 %v1067_v35, %v994_v4 }
0x10b5   :  { %v1072_v61 = vadd.f32 %v1919_v3, %v1071_v5 }
0x10b7   :  { %1557 = vtanh.f32 %v1072_v61  ;;  %v1411_v19 = vmul.f32 -1.442695, %v1072_v61 }
0x10b8   :  { %1559 = vrcp.f32 %v1142_v6 }
0x10b9   :  { %1561 = vpow2.f32 %v1411_v19 }
0x10ba   :  { %v996_v60 = vpop.f32.mrf.mxu1 }
0x10bd   :  { %v1558_v7 = vpop.eup %1557 }
0x10be   :  { %1095 = vrot.lane.b32.xlu1 %v1558_v7, %s1579_s13  ;;  %v1560_v8 = vpop.eup %1559 }
0x10bf   :  { %v1144_v9 = vmul.f32 %v1560_v8, %v1142_v6  ;;  %vm1149_vm8 = vweird.f32 %v1560_v8  ;;  %v1562_v20 = vpop.eup %1561 }
0x10c0   :  { %vm1150_vm10 = vmor %vm1148_vm9, %vm1149_vm8  ;;  %v1076_v21 = vadd.f32 1.0, %v1562_v20 }
0x10c1   :  { %v1145_v10 = vsub.f32 1.0, %v1144_v9 }
0x10c2   :  { %1563 = vrcp.f32 %v1076_v21  ;;  %v1088_v34 = vand.u32 2147483648, %v1076_v21  ;;  %vm1082_vm13 = vweird.f32 %v1076_v21  ;;  %v1086_v38 = vand.u32 2147483647, %v1076_v21 }
0x10c3   :  { %v1146_v11 = vmul.f32 %v1560_v8, %v1145_v10 }
0x10c4   :  { %v1089_v22 = vor.u32 1.1754944e-38, %v1088_v34  ;;  %vm1087_vm15 = vcmp.eq.f32.partialorder %v1086_v38, 8.507059e+37 }
0x10c5   :  { %v1147_v12 = vadd.f32 %v1560_v8, %v1146_v11 }
0x10c7   :  { %v1151_v43 = vsel %vm1150_vm10, %v1560_v8, %v1147_v12 }
0x10c8   :  { %v1156_v17 = vsel %vm1153_vm11, %v1155_v15, %v1151_v43  ;;  %v1564_v23 = vpop.eup %1563  ;;  %v1441_v15 = vld [vmem:[%s2006_s6 + $0x8] sm:$0xff] }
0x10c9   :  { %v1078_v25 = vmul.f32 %v1564_v23, %v1076_v21  ;;  %vm1083_vm12 = vweird.f32 %v1564_v23  ;;  %v1159_v39 = vmul.f32 %v1156_v17, %v1895_v30  ;;  %1291 = vmatpush.bf16.msra.mxu2 %v1441_v15  ;;  %1442 = vmatpush.bf16.msra.mxu3 %v1441_v15 }
0x10ca   :  { %vm1084_vm14 = vmor %vm1082_vm13, %vm1083_vm12 }
0x10cb   :  { %v1079_v26 = vsub.f32 1.0, %v1078_v25 }
0x10cd   :  { %v1080_v28 = vmul.f32 %v1564_v23, %v1079_v26 }
0x10cf   :  { %v1081_v32 = vadd.f32 %v1564_v23, %v1080_v28 }
0x10d1   :  { %v1085_v40 = vsel %vm1084_vm14, %v1564_v23, %v1081_v32 }
0x10d2   :  { %v1090_v44 = vsel %vm1087_vm15, %v1089_v22, %v1085_v40 }
0x10d3   :  { %v1093_v54 = vmul.f32 %v1090_v44, %v1900_v46 }
0x10da   :  { %v1162_v16 = vpop.permute.xlu2 %1161 }
0x10db   :  { %v1164_v18 = vmul.f32 %v1162_v16, %v1156_v17  ;;  %v1440_v16 = vld [vmem:[%s2006_s6] sm:$0xff] }
0x10dc   :  { %1292 = vmatpush.bf16.msra.mxu2 %v1440_v16  ;;  %1443 = vmatpush.bf16.msra.mxu3 %v1440_v16 }
0x10dd   :  { %1166 = vrot.lane.b32.xlu1 %v1164_v18, %s1580_s1 }
0x1130   :  { %v1096_v42 = vpop.permute.xlu1 %1095 }
0x1131   :  { %v1098_v27 = vmul.f32 %v1096_v42, %v1090_v44 }
0x1133   :  { %1100 = vrot.lane.b32.xlu0 %v1098_v27, %s1580_s1 }
0x114f   :  { %v1167_v48 = vpop.permute.xlu1 %1166 }
0x1150   :  { %v1169_v41 = vadd.f32 %v1167_v48, %v1159_v39 }
0x1152   :  { %1565 = vtanh.f32 %v1169_v41 }
0x1158   :  { %v1566_v52 = vpop.eup %1565 }
0x1159   :  { %1172 = vrot.lane.b32.xlu0 %v1566_v52, %s1579_s13 }
0x11a5   :  { %v1101_v47 = vpop.permute.xlu0 %1100 }
0x11a6   :  { %v1928_v56 = vadd.f32 %v1101_v47, %v1093_v54 }
0x11a8   :  { %1567 = vtanh.f32 %v1928_v56 }
0x11ae   :  { %v1568_v49 = vpop.eup %1567 }
0x11af   :  { %1106 = vrot.lane.b32.xlu2 %v1568_v49, %s1579_s13 }
0x11cb   :  { %v1173_v57 = vpop.permute.xlu0 %1172 }
0x11cc   :  { %v1175_v59 = vmul.f32 %v1173_v57, %v1156_v17 }
0x11ce   :  { %v1176_v62 = vpack.c.bf16 %v1175_v59, %v1175_v59 }
0x11d0   :  { %1178 = vrot.lane.b32.xlu2 %v1176_v62, %s1580_s1 }
0x1209   :  { %v1107_v30 = vpop.permute.xlu2 %1106 }
0x120a   :  { %v1109_v53 = vmul.f32 %v1107_v30, %v1090_v44 }
0x120c   :  { %v1116_v63 = vpack.c.bf16 %v1109_v53, %v1109_v53 }
0x120e   :  { %1118 = vrot.lane.b32.xlu1 %v1116_v63, %s1580_s1 }
0x122a   :  { %v1179_v29 = vpop.permute.xlu2 %1178 }
0x122b   :  { %1414 = vmatmul.msk.bf16.vlgmr.msra.gmra.mxu1 %vm78_vm0, %v1179_v29 }
0x1280   :  { %v1119_v46 = vpop.permute.xlu1 %1118 }
0x1281   :  { %1412 = vmatmul.msk.bf16.vlgmr.msrb.gmra.mxu0 %vm78_vm0, %v1119_v46 }
0x12a8   :  { %v1192_v36 = vpop.f32.mrf.mxu1 }
0x12b0   :  { %v1194_v35 = vpop.f32.mrf.mxu1 }
0x12fe   :  { %v1132_v0 = vpop.f32.mrf.mxu0 }
0x12ff   :  { %v1196_v1 = vadd.f32 %v1192_v36, %v1132_v0 }
0x1301   :  { %v1197_v33 = vadd.f32 %v1919_v3, %v1196_v1 }
0x1303   :  { %1569 = vtanh.f32 %v1197_v33  ;;  %v1415_v4 = vmul.f32 -1.442695, %v1197_v33 }
0x1305   :  { %1571 = vpow2.f32 %v1415_v4 }
0x1306   :  { %v1134_v37 = vpop.f32.mrf.mxu0 }
0x1309   :  { %v1570_v2 = vpop.eup %1569 }
0x130a   :  { %1220 = vrot.lane.b32.xlu0 %v1570_v2, %s1579_s13 }
0x130b   :  { %v1572_v5 = vpop.eup %1571 }
0x130c   :  { %v1201_v61 = vadd.f32 1.0, %v1572_v5 }
0x130e   :  { %1573 = vrcp.f32 %v1201_v61  ;;  %v1213_v8 = vand.u32 2147483648, %v1201_v61  ;;  %vm1207_vm2 = vweird.f32 %v1201_v61  ;;  %v1211_v9 = vand.u32 2147483647, %v1201_v61 }
0x1310   :  { %v1214_v10 = vor.u32 1.1754944e-38, %v1213_v8  ;;  %vm1212_vm4 = vcmp.eq.f32.partialorder %v1211_v9, 8.507059e+37 }
0x1312   :  { %272 = vrot.lane.b32.xlu0 %v1719_v31, %s1580_s1 }
0x1314   :  { %v1574_v24 = vpop.eup %1573 }
0x1315   :  { %v1203_v3 = vmul.f32 %v1574_v24, %v1201_v61  ;;  %vm1208_vm1 = vweird.f32 %v1574_v24 }
0x1316   :  { %vm1209_vm3 = vmor %vm1207_vm2, %vm1208_vm1 }
0x1317   :  { %v1204_v6 = vsub.f32 1.0, %v1203_v3 }
0x1319   :  { %v1205_v60 = vmul.f32 %v1574_v24, %v1204_v6 }
0x131a   :  { %973 = vrot.lane.b32.xlu0 %v1905_v51, %s1580_s1 }
0x131b   :  { %v1206_v7 = vadd.f32 %v1574_v24, %v1205_v60 }
0x131d   :  { %v1210_v31 = vsel %vm1209_vm3, %v1574_v24, %v1206_v7 }
0x131e   :  { %v1215_v11 = vsel %vm1212_vm4, %v1214_v10, %v1210_v31 }
0x1322   :  { %1111 = vrot.lane.b32.xlu0 %v1109_v53, %s1580_s1 }
0x137c   :  { %v1221_v51 = vpop.permute.xlu0 %1220 }
0x137d   :  { %v1223_v12 = vmul.f32 %v1221_v51, %v1215_v11 }
0x137f   :  { %1225 = vrot.lane.b32.xlu1 %v1223_v12, %s1580_s1 }
0x1384   :  { %v273_v13 = vpop.permute.xlu0 %272 }
0x1385   :  { %275 = vst.msk [vmem:[#allocation3] sm:$0xff] %vm78_vm0, %v273_v13 }
0x1387   :  { %421 = vrot.lane.b32.xlu1 %v1769_v45, %s1580_s1  ;;  %v1218_v45 = vmul.f32 %v1215_v11, %v1928_v56 }
0x138c   :  { %v974_v14 = vpop.permute.xlu0 %973  ;;  %v1241_v21 = vld [vmem:[#allocation3] sm:$0xff] }
0x138d   :  { %977 = vst.msk [vmem:[#allocation3 + $0x28] sm:$0xff] %vm78_vm0, %v974_v14 }
0x138f   :  { %559 = vrot.lane.b32.xlu1 %v1800_v50, %s1580_s1 }
0x1394   :  { %v1112_v43 = vpop.permute.xlu0 %1111  ;;  %v1246_v40 = vld [vmem:[#allocation3 + $0x28] sm:$0xff] }
0x1395   :  { %1115 = vst.msk [vmem:[#allocation3 + $0x30] sm:$0xff] %vm78_vm0, %v1112_v43 }
0x139c   :  { %v1247_v54 = vld [vmem:[#allocation3 + $0x30] sm:$0xff] }
0x13f1   :  { %v1226_v17 = vpop.permute.xlu1 %1225 }
0x13f2   :  { %v1228_v18 = vadd.f32 %v1226_v17, %v1218_v45 }
0x13f4   :  { %1575 = vtanh.f32 %v1228_v18 }
0x13f9   :  { %v422_v50 = vpop.permute.xlu1 %421 }
0x13fa   :  { %v1576_v19 = vpop.eup %1575  ;;  %425 = vst.msk [vmem:[#allocation3 + $0x8] sm:$0xff] %vm78_vm0, %v422_v50 }
0x13fb   :  { %1231 = vrot.lane.b32.xlu2 %v1576_v19, %s1579_s13 }
0x1401   :  { %v560_v20 = vpop.permute.xlu1 %559  ;;  %v1242_v23 = vld [vmem:[#allocation3 + $0x8] sm:$0xff] }
0x1402   :  { %563 = vst.msk [vmem:[#allocation3 + $0x10] sm:$0xff] %vm78_vm0, %v560_v20  ;;  %v1249_v25 = vpack.c.bf16 %v1242_v23, %v1241_v21 }
0x1403   :  { %835 = vrot.lane.b32.xlu2 %v1874_v58, %s1580_s1 }
0x1404   :  { %1424 = vmatmul.msk.bf16.vlgmr.msra.gmra.mxu2 %vm78_vm0, %v1249_v25 }
0x1409   :  { %v1243_v58 = vld [vmem:[#allocation3 + $0x10] sm:$0xff] }
0x140b   :  { %697 = vrot.lane.b32.xlu2 %v1839_v55, %s1580_s1  ;;  %v1448_v55 = vld [vmem:[%s2007_s7] ss:$0 sm:$0xff] }
0x1455   :  { %v1232_v26 = vpop.permute.xlu2 %1231 }
0x1456   :  { %v1234_v28 = vmul.f32 %v1232_v26, %v1215_v11 }
0x1458   :  { %1236 = vrot.lane.b32.xlu1 %v1234_v28, %s1580_s1 }
0x145d   :  { %v836_v32 = vpop.permute.xlu2 %835 }
0x145e   :  { %839 = vst.msk [vmem:[#allocation3 + $0x20] sm:$0xff] %vm78_vm0, %v836_v32 }
0x1465   :  { %v698_v34 = vpop.permute.xlu2 %697  ;;  %v1245_v38 = vld [vmem:[#allocation3 + $0x20] sm:$0xff] }
0x1466   :  { %701 = vst.msk [vmem:[#allocation3 + $0x18] sm:$0xff] %vm78_vm0, %v698_v34  ;;  %v1251_v22 = vpack.c.bf16 %v1246_v40, %v1245_v38 }
0x1468   :  { %1426 = vmatmul.msk.bf16.vlgmr.msra.gmra.mxu3 %vm78_vm0, %v1251_v22 }
0x146d   :  { %v1244_v42 = vld [vmem:[#allocation3 + $0x18] sm:$0xff] }
0x146e   :  { %v1250_v44 = vpack.c.bf16 %v1244_v42, %v1243_v58 }
0x1470   :  { %1425 = vmatmul.msk.bf16.gmra.mxu2 %vm78_vm0, %v1250_v44 }
0x1487   :  { %v1294_v27 = vpop.f32.mrf.mxu2 }
0x1488   :  { %v1295_v39 = vadd.f32 %v1448_v55, %v1294_v27 }
0x148a   :  { %1314 = vst [vmem:[%s2008_s8] sm:$0xff] %v1295_v39 }
0x148f   :  { %v1296_v48 = vpop.f32.mrf.mxu2 }
0x1490   :  { %v1297_v41 = vadd.f32 %v1448_v55, %v1296_v48 }
0x1492   :  { %1315 = vst [vmem:[%s2008_s8 + $0x8] sm:$0xff] %v1297_v41 }
0x14ca   :  { %v1237_v52 = vpop.permute.xlu1 %1236 }
0x14cb   :  { %1240 = vst.msk [vmem:[#allocation3 + $0x38] sm:$0xff] %vm78_vm0, %v1237_v52 }
0x14d2   :  { %v1248_v47 = vld [vmem:[#allocation3 + $0x38] sm:$0xff] }
0x14d3   :  { %v1252_v56 = vpack.c.bf16 %v1248_v47, %v1247_v54 }
0x14d5   :  { %1427 = vmatmul.msk.bf16.gmra.mxu3 %vm78_vm0, %v1252_v56 }
0x14eb   :  { %v1304_v49 = vpop.f32.mrf.mxu3 }
0x14ec   :  { %v1305_v57 = vadd.f32 %v1448_v55, %v1304_v49 }
0x14ee   :  { %1318 = vst [vmem:[%s2008_s8 + $0x20] sm:$0xff] %v1305_v57 }
0x14f3   :  { %v1299_v59 = vpop.f32.mrf.mxu2  ;;  %v1306_v62 = vpop.f32.mrf.mxu3 }
0x14f4   :  { %v1300_v30 = vadd.f32 %v1448_v55, %v1299_v59  ;;  %v1307_v53 = vadd.f32 %v1448_v55, %v1306_v62 }
0x14f6   :  { %1316 = vst [vmem:[%s2008_s8 + $0x10] sm:$0xff] %v1300_v30 }
0x14f7   :  { %1319 = vst [vmem:[%s2008_s8 + $0x28] sm:$0xff] %v1307_v53 }
0x14fb   :  { %v1301_v63 = vpop.f32.mrf.mxu2 }
0x14fc   :  { %v1302_v29 = vadd.f32 %v1448_v55, %v1301_v63 }
0x14fe   :  { %1317 = vst [vmem:[%s2008_s8 + $0x18] sm:$0xff] %v1302_v29 }
0x1558   :  { %v1309_v46 = vpop.f32.mrf.mxu3 }
0x1559   :  { %v1310_v36 = vadd.f32 %v1448_v55, %v1309_v46 }
0x155b   :  { %1320 = vst [vmem:[%s2008_s8 + $0x30] sm:$0xff] %v1310_v36 }
0x1560   :  { %v1311_v35 = vpop.f32.mrf.mxu3 }
0x1561   :  { %v1312_v0 = vadd.f32 %v1448_v55, %v1311_v35 }
0x1563   :  { %1321 = vst [vmem:[%s2008_s8 + $0x38] sm:$0xff] %v1312_v0 }

</bundles_post_ra>
